<compile_context>
chip_gen: v5e
topology: v5e:2x2
jax: 0.10.0
libtpu: 0.0.40
codegen_flags: <defaults>
</compile_context>

<pallas_src>
import jax
import jax.numpy as jnp
import numpy as np
from jax.experimental import pallas as pl
from jax.experimental.pallas import tpu as pltpu


def _attention_kernel(num_heads, head_dim, block_b, seq_len):
    C = num_heads * head_dim
    M = block_b * seq_len

    def kernel(x_ref, wqkv_ref, wproj_ref, bias_ref, o_ref, concat_ref):
        x = x_ref[...].reshape(M, C)                       # (M, C), input dtype
        in_dtype = x.dtype

        # Fused QKV projection: one lane-dense K=C matmul, f32 accumulation.
        # scale is already folded into the q-columns of Wqkv.
        qkv = jnp.dot(x, wqkv_ref[...],
                      preferred_element_type=jnp.float32)  # (M, 3C) f32

        # Column layout matches torch's reshape(B,N,3,H,hd): [q | k | v],
        # head h at columns h*hd:(h+1)*hd inside each third.
        q = qkv[:, :C].astype(in_dtype)
        k = qkv[:, C:2 * C].astype(in_dtype)
        v = qkv[:, 2 * C:].astype(in_dtype)

        for b in range(block_b):                           # static unroll over batch block
            r0 = b * seq_len
            for h in range(num_heads):                     # static unroll over heads
                lo = h * head_dim
                q_bh = q[r0:r0 + seq_len, lo:lo + head_dim]   # (N, hd)
                k_bh = k[r0:r0 + seq_len, lo:lo + head_dim]   # (N, hd)
                v_bh = v[r0:r0 + seq_len, lo:lo + head_dim]   # (N, hd)

                # scores: q_h @ k_h^T (contract last dims), f32 accumulation
                s = jax.lax.dot_general(
                    q_bh, k_bh, (((1,), (1,)), ((), ())),
                    preferred_element_type=jnp.float32)       # (N, N) f32

                # numerically-stable softmax; normalization deferred past p @ v
                s = s - jnp.max(s, axis=-1, keepdims=True)
                p = jnp.exp(s)                                # unnormalized probs
                denom = jnp.sum(p, axis=-1, keepdims=True)    # (N, 1)

                o_bh = jnp.dot(p.astype(in_dtype), v_bh,
                               preferred_element_type=jnp.float32)  # (N, hd) f32
                o_bh = o_bh / denom                           # exact normalization

                # Write head output into the scratch slab at static offsets.
                concat_ref[r0:r0 + seq_len, lo:lo + head_dim] = o_bh

        # Single K=C output projection + bias.
        out = jnp.dot(concat_ref[...].astype(in_dtype), wproj_ref[...],
                      preferred_element_type=jnp.float32)     # (M, C) f32
        out = out + bias_ref[...].astype(jnp.float32)
        o_ref[...] = out.reshape(block_b, seq_len, C).astype(o_ref.dtype)

    return kernel


def _pick_block_b(B, N, C, itemsize, budget_bytes=4 << 20):
    """Largest divisor of B whose x-block fits a small per-step budget."""
    for cand in range(B, 0, -1):
        if B % cand == 0 and cand * N * C * itemsize <= budget_bytes:
            return cand
    return 1


def attention_pallas(x, w_qkv, w_proj, b_proj, num_heads):
    """x: (B, N, C); w_qkv: (3C, C) [torch Linear layout]; w_proj: (C, C); b_proj: (C,)."""
    B, N, C = x.shape
    head_dim = C // num_heads
    scale = head_dim ** (-0.5)
    itemsize = jnp.dtype(x.dtype).itemsize

    # --- one-time weight prep (plain JAX glue, outside the kernel) ------------
    # Transpose to matmul layout and ship in the activation dtype.
    wqkv_t = w_qkv.T.astype(x.dtype)                  # (C, 3C)
    # Fold the softmax scale into the q-columns (first C output columns).
    wqkv_t = jnp.concatenate([wqkv_t[:, :C] * jnp.asarray(scale, x.dtype),
                              wqkv_t[:, C:]], axis=-1)
    wproj_t = w_proj.T.astype(x.dtype)                # (C, C)
    bias = b_proj.reshape(1, C).astype(x.dtype)       # (1, C)

    # --- blocking / grid -------------------------------------------------------
    block_b = _pick_block_b(B, N, C, itemsize)
    grid = (B // block_b,)
    M = block_b * N

    # --- VMEM budget estimate (weights single-buffered, x/o double-buffered) ---
    f32 = 4
    weight_bytes = (C * 3 * C + C * C + C) * itemsize
    io_bytes = 2 * 2 * (block_b * N * C) * itemsize
    scratch_bytes = M * C * f32
    act_bytes = 6 * (M * 3 * C) * f32 + 2 * (N * N) * f32
    est = weight_bytes + io_bytes + scratch_bytes + act_bytes + (8 << 20)
    vmem_limit = int(min(max(est, 32 << 20), 64 << 20))

    out = pl.pallas_call(
        _attention_kernel(num_heads, head_dim, block_b, N),
        out_shape=jax.ShapeDtypeStruct((B, N, C), x.dtype),
        grid_spec=pltpu.PrefetchScalarGridSpec(
            num_scalar_prefetch=0,
            grid=grid,
            in_specs=[
                pl.BlockSpec((block_b, N, C), lambda b: (b, 0, 0)),        # x
                pl.BlockSpec((C, 3 * C), lambda b: (0, 0),
                             pipeline_mode=pl.Buffered(1)),                # Wqkv (resident)
                pl.BlockSpec((C, C), lambda b: (0, 0),
                             pipeline_mode=pl.Buffered(1)),                # Wproj (resident)
                pl.BlockSpec((1, C), lambda b: (0, 0),
                             pipeline_mode=pl.Buffered(1)),                # bias (resident)
            ],
            out_specs=pl.BlockSpec((block_b, N, C), lambda b: (b, 0, 0)),
            scratch_shapes=[pltpu.VMEM((M, C), jnp.float32)],              # head-output slab
        ),
        compiler_params=pltpu.CompilerParams(
            dimension_semantics=("parallel",),
            vmem_limit_bytes=vmem_limit,
        ),
    )(x, wqkv_t, wproj_t, bias)
    return out


def attention_reference(x, w_qkv, w_proj, b_proj, num_heads):
    """Plain-JAX reference matching the PyTorch forward exactly."""
    B, N, C = x.shape
    hd = C // num_heads
    scale = hd ** (-0.5)
    qkv = x @ w_qkv.T                                   # (B, N, 3C)
    qkv = qkv.reshape(B, N, 3, num_heads, hd).transpose(2, 0, 3, 1, 4)
    q, k, v = qkv[0], qkv[1], qkv[2]                    # (B, H, N, hd)
    q = q * scale
    attn = q @ jnp.swapaxes(k, -2, -1)                  # (B, H, N, N)
    attn = jax.nn.softmax(attn, axis=-1)
    o = (attn @ v).transpose(0, 2, 1, 3).reshape(B, N, C)
    return o @ w_proj.T + b_proj


if __name__ == "__main__":
    B, N, C = 2, 8, 32
    num_heads = 8

    key = jax.random.PRNGKey(0)
    kx, kqkv, kp, kb = jax.random.split(key, 4)

    x = jax.random.normal(kx, (B, N, C), dtype=jnp.float32)
    # nn.Linear(dim, dim*3, bias=False): weight (3C, C)
    w_qkv = jax.random.normal(kqkv, (3 * C, C), dtype=jnp.float32) * (C ** -0.5)
    # nn.Linear(dim, dim): weight (C, C), bias (C,)
    w_proj = jax.random.normal(kp, (C, C), dtype=jnp.float32) * (C ** -0.5)
    b_proj = jax.random.normal(kb, (C,), dtype=jnp.float32) * 0.01

    out = attention_pallas(x, w_qkv, w_proj, b_proj, num_heads)
    out = jax.block_until_ready(out)

    ref = attention_reference(x, w_qkv, w_proj, b_proj, num_heads)
    # Softmax normalization is now an exact divide; remaining tolerance only
    # covers matmul rounding / op-ordering differences vs. the reference.
    np.testing.assert_allclose(np.asarray(out), np.asarray(ref), rtol=2e-3, atol=2e-3)

    print("KERNEL_OK")
</pallas_src>

<mosaic_0001>
module attributes {stable_mosaic.version = 11 : i64} {
  func.func @kernel(%arg0: i32, %arg1: memref<2x8x32xf32, #tpu.memory_space<vmem>>, %arg2: memref<32x96xf32, #tpu.memory_space<vmem>>, %arg3: memref<32x32xf32, #tpu.memory_space<vmem>>, %arg4: memref<1x32xf32, #tpu.memory_space<vmem>>, %arg5: memref<2x8x32xf32, #tpu.memory_space<vmem>>, %arg6: memref<16x32xf32, #tpu.memory_space<vmem>>) attributes {dimension_semantics = [#tpu.dimension_semantics<parallel>], iteration_bounds = array<i64: 1>, scalar_prefetch = 0 : i64, scratch_operands = 1 : i64, tpu.core_type = #tpu.core_type<tc>, window_params = [{transform_indices = @transform_0, window_bounds = array<i64: 2, 8, 32>}, {pipeline_mode = #tpu.pipeline_mode<synchronous>, transform_indices = @transform_1, window_bounds = array<i64: 32, 96>}, {pipeline_mode = #tpu.pipeline_mode<synchronous>, transform_indices = @transform_2, window_bounds = array<i64: 32, 32>}, {pipeline_mode = #tpu.pipeline_mode<synchronous>, transform_indices = @transform_3, window_bounds = array<i64: 1, 32>}, {transform_indices = @transform_4, window_bounds = array<i64: 2, 8, 32>}]} {
    %c0 = arith.constant 0 : index
    %c0_0 = arith.constant 0 : index
    %c0_1 = arith.constant 0 : index
    %0 = vector.load %arg1[%c0, %c0_0, %c0_1] : memref<2x8x32xf32, #tpu.memory_space<vmem>>, vector<2x8x32xf32>
    %1 = vector.shape_cast %0 : vector<2x8x32xf32> to vector<16x32xf32>
    %c0_2 = arith.constant 0 : index
    %c0_3 = arith.constant 0 : index
    %2 = vector.load %arg2[%c0_2, %c0_3] : memref<32x96xf32, #tpu.memory_space<vmem>>, vector<32x96xf32>
    %cst = arith.constant dense<0.000000e+00> : vector<16x96xf32>
    %3 = tpu.matmul %1, %2, %cst {dimension_numbers = #tpu.dot_dimension_numbers<[1], [0], [0], [1], [0, 0, 1, 1], [], []>} : vector<16x32xf32>, vector<32x96xf32>, vector<16x96xf32> -> vector<16x96xf32>
    %4 = vector.extract_strided_slice %3 {offsets = [0, 0], sizes = [16, 32], strides = [1, 1]} : vector<16x96xf32> to vector<16x32xf32>
    %5 = vector.extract_strided_slice %3 {offsets = [0, 32], sizes = [16, 32], strides = [1, 1]} : vector<16x96xf32> to vector<16x32xf32>
    %6 = vector.extract_strided_slice %3 {offsets = [0, 64], sizes = [16, 32], strides = [1, 1]} : vector<16x96xf32> to vector<16x32xf32>
    %7 = vector.extract_strided_slice %4 {offsets = [0, 0], sizes = [8, 4], strides = [1, 1]} : vector<16x32xf32> to vector<8x4xf32>
    %8 = vector.extract_strided_slice %5 {offsets = [0, 0], sizes = [8, 4], strides = [1, 1]} : vector<16x32xf32> to vector<8x4xf32>
    %9 = vector.extract_strided_slice %6 {offsets = [0, 0], sizes = [8, 4], strides = [1, 1]} : vector<16x32xf32> to vector<8x4xf32>
    %cst_4 = arith.constant dense<0.000000e+00> : vector<8x8xf32>
    %10 = tpu.matmul %7, %8, %cst_4 {dimension_numbers = #tpu.dot_dimension_numbers<[1], [1], [0], [0], [0, 0, 1, 0], [], []>} : vector<8x4xf32>, vector<8x4xf32>, vector<8x8xf32> -> vector<8x8xf32>
    %cst_5 = arith.constant dense<0xFF800000> : vector<8xf32>
    %11 = vector.multi_reduction <maximumf>, %10, %cst_5 [1] : vector<8x8xf32> to vector<8xf32>
    %12 = vector.shape_cast %11 : vector<8xf32> to vector<8x1xf32>
    %13 = vector.broadcast %12 : vector<8x1xf32> to vector<8x8xf32>
    %14 = arith.subf %10, %13 : vector<8x8xf32>
    %15 = math.exp %14 : vector<8x8xf32>
    %cst_6 = arith.constant dense<0.000000e+00> : vector<8xf32>
    %16 = vector.multi_reduction <add>, %15, %cst_6 [1] : vector<8x8xf32> to vector<8xf32>
    %17 = vector.shape_cast %16 : vector<8xf32> to vector<8x1xf32>
    %cst_7 = arith.constant dense<0.000000e+00> : vector<8x4xf32>
    %18 = tpu.matmul %15, %9, %cst_7 {dimension_numbers = #tpu.dot_dimension_numbers<[1], [0], [0], [1], [0, 0, 1, 1], [], []>} : vector<8x8xf32>, vector<8x4xf32>, vector<8x4xf32> -> vector<8x4xf32>
    %19 = vector.broadcast %17 : vector<8x1xf32> to vector<8x4xf32>
    %20 = arith.divf %18, %19 : vector<8x4xf32>
    %c0_8 = arith.constant 0 : index
    %c0_9 = arith.constant 0 : index
    %21 = vector.load %arg6[%c0_8, %c0_9] : memref<16x32xf32, #tpu.memory_space<vmem>>, vector<8x4xf32>
    tpu.vector_store %arg6[%c0_8, %c0_9], %20 {strides = array<i32>} : memref<16x32xf32, #tpu.memory_space<vmem>>, vector<8x4xf32>,
    %22 = vector.extract_strided_slice %4 {offsets = [0, 4], sizes = [8, 4], strides = [1, 1]} : vector<16x32xf32> to vector<8x4xf32>
    %23 = vector.extract_strided_slice %5 {offsets = [0, 4], sizes = [8, 4], strides = [1, 1]} : vector<16x32xf32> to vector<8x4xf32>
    %24 = vector.extract_strided_slice %6 {offsets = [0, 4], sizes = [8, 4], strides = [1, 1]} : vector<16x32xf32> to vector<8x4xf32>
    %cst_10 = arith.constant dense<0.000000e+00> : vector<8x8xf32>
    %25 = tpu.matmul %22, %23, %cst_10 {dimension_numbers = #tpu.dot_dimension_numbers<[1], [1], [0], [0], [0, 0, 1, 0], [], []>} : vector<8x4xf32>, vector<8x4xf32>, vector<8x8xf32> -> vector<8x8xf32>
    %cst_11 = arith.constant dense<0xFF800000> : vector<8xf32>
    %26 = vector.multi_reduction <maximumf>, %25, %cst_11 [1] : vector<8x8xf32> to vector<8xf32>
    %27 = vector.shape_cast %26 : vector<8xf32> to vector<8x1xf32>
    %28 = vector.broadcast %27 : vector<8x1xf32> to vector<8x8xf32>
    %29 = arith.subf %25, %28 : vector<8x8xf32>
    %30 = math.exp %29 : vector<8x8xf32>
    %cst_12 = arith.constant dense<0.000000e+00> : vector<8xf32>
    %31 = vector.multi_reduction <add>, %30, %cst_12 [1] : vector<8x8xf32> to vector<8xf32>
    %32 = vector.shape_cast %31 : vector<8xf32> to vector<8x1xf32>
    %cst_13 = arith.constant dense<0.000000e+00> : vector<8x4xf32>
    %33 = tpu.matmul %30, %24, %cst_13 {dimension_numbers = #tpu.dot_dimension_numbers<[1], [0], [0], [1], [0, 0, 1, 1], [], []>} : vector<8x8xf32>, vector<8x4xf32>, vector<8x4xf32> -> vector<8x4xf32>
    %34 = vector.broadcast %32 : vector<8x1xf32> to vector<8x4xf32>
    %35 = arith.divf %33, %34 : vector<8x4xf32>
    %c0_14 = arith.constant 0 : index
    %c4 = arith.constant 4 : index
    %36 = vector.load %arg6[%c0_14, %c4] : memref<16x32xf32, #tpu.memory_space<vmem>>, vector<8x4xf32>
    tpu.vector_store %arg6[%c0_14, %c4], %35 {strides = array<i32>} : memref<16x32xf32, #tpu.memory_space<vmem>>, vector<8x4xf32>,
    %37 = vector.extract_strided_slice %4 {offsets = [0, 8], sizes = [8, 4], strides = [1, 1]} : vector<16x32xf32> to vector<8x4xf32>
    %38 = vector.extract_strided_slice %5 {offsets = [0, 8], sizes = [8, 4], strides = [1, 1]} : vector<16x32xf32> to vector<8x4xf32>
    %39 = vector.extract_strided_slice %6 {offsets = [0, 8], sizes = [8, 4], strides = [1, 1]} : vector<16x32xf32> to vector<8x4xf32>
    %cst_15 = arith.constant dense<0.000000e+00> : vector<8x8xf32>
    %40 = tpu.matmul %37, %38, %cst_15 {dimension_numbers = #tpu.dot_dimension_numbers<[1], [1], [0], [0], [0, 0, 1, 0], [], []>} : vector<8x4xf32>, vector<8x4xf32>, vector<8x8xf32> -> vector<8x8xf32>
    %cst_16 = arith.constant dense<0xFF800000> : vector<8xf32>
    %41 = vector.multi_reduction <maximumf>, %40, %cst_16 [1] : vector<8x8xf32> to vector<8xf32>
    %42 = vector.shape_cast %41 : vector<8xf32> to vector<8x1xf32>
    %43 = vector.broadcast %42 : vector<8x1xf32> to vector<8x8xf32>
    %44 = arith.subf %40, %43 : vector<8x8xf32>
    %45 = math.exp %44 : vector<8x8xf32>
    %cst_17 = arith.constant dense<0.000000e+00> : vector<8xf32>
    %46 = vector.multi_reduction <add>, %45, %cst_17 [1] : vector<8x8xf32> to vector<8xf32>
    %47 = vector.shape_cast %46 : vector<8xf32> to vector<8x1xf32>
    %cst_18 = arith.constant dense<0.000000e+00> : vector<8x4xf32>
    %48 = tpu.matmul %45, %39, %cst_18 {dimension_numbers = #tpu.dot_dimension_numbers<[1], [0], [0], [1], [0, 0, 1, 1], [], []>} : vector<8x8xf32>, vector<8x4xf32>, vector<8x4xf32> -> vector<8x4xf32>
    %49 = vector.broadcast %47 : vector<8x1xf32> to vector<8x4xf32>
    %50 = arith.divf %48, %49 : vector<8x4xf32>
    %c0_19 = arith.constant 0 : index
    %c8 = arith.constant 8 : index
    %51 = vector.load %arg6[%c0_19, %c8] : memref<16x32xf32, #tpu.memory_space<vmem>>, vector<8x4xf32>
    tpu.vector_store %arg6[%c0_19, %c8], %50 {strides = array<i32>} : memref<16x32xf32, #tpu.memory_space<vmem>>, vector<8x4xf32>,
    %52 = vector.extract_strided_slice %4 {offsets = [0, 12], sizes = [8, 4], strides = [1, 1]} : vector<16x32xf32> to vector<8x4xf32>
    %53 = vector.extract_strided_slice %5 {offsets = [0, 12], sizes = [8, 4], strides = [1, 1]} : vector<16x32xf32> to vector<8x4xf32>
    %54 = vector.extract_strided_slice %6 {offsets = [0, 12], sizes = [8, 4], strides = [1, 1]} : vector<16x32xf32> to vector<8x4xf32>
    %cst_20 = arith.constant dense<0.000000e+00> : vector<8x8xf32>
    %55 = tpu.matmul %52, %53, %cst_20 {dimension_numbers = #tpu.dot_dimension_numbers<[1], [1], [0], [0], [0, 0, 1, 0], [], []>} : vector<8x4xf32>, vector<8x4xf32>, vector<8x8xf32> -> vector<8x8xf32>
    %cst_21 = arith.constant dense<0xFF800000> : vector<8xf32>
    %56 = vector.multi_reduction <maximumf>, %55, %cst_21 [1] : vector<8x8xf32> to vector<8xf32>
    %57 = vector.shape_cast %56 : vector<8xf32> to vector<8x1xf32>
    %58 = vector.broadcast %57 : vector<8x1xf32> to vector<8x8xf32>
    %59 = arith.subf %55, %58 : vector<8x8xf32>
    %60 = math.exp %59 : vector<8x8xf32>
    %cst_22 = arith.constant dense<0.000000e+00> : vector<8xf32>
    %61 = vector.multi_reduction <add>, %60, %cst_22 [1] : vector<8x8xf32> to vector<8xf32>
    %62 = vector.shape_cast %61 : vector<8xf32> to vector<8x1xf32>
    %cst_23 = arith.constant dense<0.000000e+00> : vector<8x4xf32>
    %63 = tpu.matmul %60, %54, %cst_23 {dimension_numbers = #tpu.dot_dimension_numbers<[1], [0], [0], [1], [0, 0, 1, 1], [], []>} : vector<8x8xf32>, vector<8x4xf32>, vector<8x4xf32> -> vector<8x4xf32>
    %64 = vector.broadcast %62 : vector<8x1xf32> to vector<8x4xf32>
    %65 = arith.divf %63, %64 : vector<8x4xf32>
    %c0_24 = arith.constant 0 : index
    %c12 = arith.constant 12 : index
    %66 = vector.load %arg6[%c0_24, %c12] : memref<16x32xf32, #tpu.memory_space<vmem>>, vector<8x4xf32>
    tpu.vector_store %arg6[%c0_24, %c12], %65 {strides = array<i32>} : memref<16x32xf32, #tpu.memory_space<vmem>>, vector<8x4xf32>,
    %67 = vector.extract_strided_slice %4 {offsets = [0, 16], sizes = [8, 4], strides = [1, 1]} : vector<16x32xf32> to vector<8x4xf32>
    %68 = vector.extract_strided_slice %5 {offsets = [0, 16], sizes = [8, 4], strides = [1, 1]} : vector<16x32xf32> to vector<8x4xf32>
    %69 = vector.extract_strided_slice %6 {offsets = [0, 16], sizes = [8, 4], strides = [1, 1]} : vector<16x32xf32> to vector<8x4xf32>
    %cst_25 = arith.constant dense<0.000000e+00> : vector<8x8xf32>
    %70 = tpu.matmul %67, %68, %cst_25 {dimension_numbers = #tpu.dot_dimension_numbers<[1], [1], [0], [0], [0, 0, 1, 0], [], []>} : vector<8x4xf32>, vector<8x4xf32>, vector<8x8xf32> -> vector<8x8xf32>
    %cst_26 = arith.constant dense<0xFF800000> : vector<8xf32>
    %71 = vector.multi_reduction <maximumf>, %70, %cst_26 [1] : vector<8x8xf32> to vector<8xf32>
    %72 = vector.shape_cast %71 : vector<8xf32> to vector<8x1xf32>
    %73 = vector.broadcast %72 : vector<8x1xf32> to vector<8x8xf32>
    %74 = arith.subf %70, %73 : vector<8x8xf32>
    %75 = math.exp %74 : vector<8x8xf32>
    %cst_27 = arith.constant dense<0.000000e+00> : vector<8xf32>
    %76 = vector.multi_reduction <add>, %75, %cst_27 [1] : vector<8x8xf32> to vector<8xf32>
    %77 = vector.shape_cast %76 : vector<8xf32> to vector<8x1xf32>
    %cst_28 = arith.constant dense<0.000000e+00> : vector<8x4xf32>
    %78 = tpu.matmul %75, %69, %cst_28 {dimension_numbers = #tpu.dot_dimension_numbers<[1], [0], [0], [1], [0, 0, 1, 1], [], []>} : vector<8x8xf32>, vector<8x4xf32>, vector<8x4xf32> -> vector<8x4xf32>
    %79 = vector.broadcast %77 : vector<8x1xf32> to vector<8x4xf32>
    %80 = arith.divf %78, %79 : vector<8x4xf32>
    %c0_29 = arith.constant 0 : index
    %c16 = arith.constant 16 : index
    %81 = vector.load %arg6[%c0_29, %c16] : memref<16x32xf32, #tpu.memory_space<vmem>>, vector<8x4xf32>
    tpu.vector_store %arg6[%c0_29, %c16], %80 {strides = array<i32>} : memref<16x32xf32, #tpu.memory_space<vmem>>, vector<8x4xf32>,
    %82 = vector.extract_strided_slice %4 {offsets = [0, 20], sizes = [8, 4], strides = [1, 1]} : vector<16x32xf32> to vector<8x4xf32>
    %83 = vector.extract_strided_slice %5 {offsets = [0, 20], sizes = [8, 4], strides = [1, 1]} : vector<16x32xf32> to vector<8x4xf32>
    %84 = vector.extract_strided_slice %6 {offsets = [0, 20], sizes = [8, 4], strides = [1, 1]} : vector<16x32xf32> to vector<8x4xf32>
    %cst_30 = arith.constant dense<0.000000e+00> : vector<8x8xf32>
    %85 = tpu.matmul %82, %83, %cst_30 {dimension_numbers = #tpu.dot_dimension_numbers<[1], [1], [0], [0], [0, 0, 1, 0], [], []>} : vector<8x4xf32>, vector<8x4xf32>, vector<8x8xf32> -> vector<8x8xf32>
    %cst_31 = arith.constant dense<0xFF800000> : vector<8xf32>
    %86 = vector.multi_reduction <maximumf>, %85, %cst_31 [1] : vector<8x8xf32> to vector<8xf32>
    %87 = vector.shape_cast %86 : vector<8xf32> to vector<8x1xf32>
    %88 = vector.broadcast %87 : vector<8x1xf32> to vector<8x8xf32>
    %89 = arith.subf %85, %88 : vector<8x8xf32>
    %90 = math.exp %89 : vector<8x8xf32>
    %cst_32 = arith.constant dense<0.000000e+00> : vector<8xf32>
    %91 = vector.multi_reduction <add>, %90, %cst_32 [1] : vector<8x8xf32> to vector<8xf32>
    %92 = vector.shape_cast %91 : vector<8xf32> to vector<8x1xf32>
    %cst_33 = arith.constant dense<0.000000e+00> : vector<8x4xf32>
    %93 = tpu.matmul %90, %84, %cst_33 {dimension_numbers = #tpu.dot_dimension_numbers<[1], [0], [0], [1], [0, 0, 1, 1], [], []>} : vector<8x8xf32>, vector<8x4xf32>, vector<8x4xf32> -> vector<8x4xf32>
    %94 = vector.broadcast %92 : vector<8x1xf32> to vector<8x4xf32>
    %95 = arith.divf %93, %94 : vector<8x4xf32>
    %c0_34 = arith.constant 0 : index
    %c20 = arith.constant 20 : index
    %96 = vector.load %arg6[%c0_34, %c20] : memref<16x32xf32, #tpu.memory_space<vmem>>, vector<8x4xf32>
    tpu.vector_store %arg6[%c0_34, %c20], %95 {strides = array<i32>} : memref<16x32xf32, #tpu.memory_space<vmem>>, vector<8x4xf32>,
    %97 = vector.extract_strided_slice %4 {offsets = [0, 24], sizes = [8, 4], strides = [1, 1]} : vector<16x32xf32> to vector<8x4xf32>
    %98 = vector.extract_strided_slice %5 {offsets = [0, 24], sizes = [8, 4], strides = [1, 1]} : vector<16x32xf32> to vector<8x4xf32>
    %99 = vector.extract_strided_slice %6 {offsets = [0, 24], sizes = [8, 4], strides = [1, 1]} : vector<16x32xf32> to vector<8x4xf32>
    %cst_35 = arith.constant dense<0.000000e+00> : vector<8x8xf32>
    %100 = tpu.matmul %97, %98, %cst_35 {dimension_numbers = #tpu.dot_dimension_numbers<[1], [1], [0], [0], [0, 0, 1, 0], [], []>} : vector<8x4xf32>, vector<8x4xf32>, vector<8x8xf32> -> vector<8x8xf32>
    %cst_36 = arith.constant dense<0xFF800000> : vector<8xf32>
    %101 = vector.multi_reduction <maximumf>, %100, %cst_36 [1] : vector<8x8xf32> to vector<8xf32>
    %102 = vector.shape_cast %101 : vector<8xf32> to vector<8x1xf32>
    %103 = vector.broadcast %102 : vector<8x1xf32> to vector<8x8xf32>
    %104 = arith.subf %100, %103 : vector<8x8xf32>
    %105 = math.exp %104 : vector<8x8xf32>
    %cst_37 = arith.constant dense<0.000000e+00> : vector<8xf32>
    %106 = vector.multi_reduction <add>, %105, %cst_37 [1] : vector<8x8xf32> to vector<8xf32>
    %107 = vector.shape_cast %106 : vector<8xf32> to vector<8x1xf32>
    %cst_38 = arith.constant dense<0.000000e+00> : vector<8x4xf32>
    %108 = tpu.matmul %105, %99, %cst_38 {dimension_numbers = #tpu.dot_dimension_numbers<[1], [0], [0], [1], [0, 0, 1, 1], [], []>} : vector<8x8xf32>, vector<8x4xf32>, vector<8x4xf32> -> vector<8x4xf32>
    %109 = vector.broadcast %107 : vector<8x1xf32> to vector<8x4xf32>
    %110 = arith.divf %108, %109 : vector<8x4xf32>
    %c0_39 = arith.constant 0 : index
    %c24 = arith.constant 24 : index
    %111 = vector.load %arg6[%c0_39, %c24] : memref<16x32xf32, #tpu.memory_space<vmem>>, vector<8x4xf32>
    tpu.vector_store %arg6[%c0_39, %c24], %110 {strides = array<i32>} : memref<16x32xf32, #tpu.memory_space<vmem>>, vector<8x4xf32>,
    %112 = vector.extract_strided_slice %4 {offsets = [0, 28], sizes = [8, 4], strides = [1, 1]} : vector<16x32xf32> to vector<8x4xf32>
    %113 = vector.extract_strided_slice %5 {offsets = [0, 28], sizes = [8, 4], strides = [1, 1]} : vector<16x32xf32> to vector<8x4xf32>
    %114 = vector.extract_strided_slice %6 {offsets = [0, 28], sizes = [8, 4], strides = [1, 1]} : vector<16x32xf32> to vector<8x4xf32>
    %cst_40 = arith.constant dense<0.000000e+00> : vector<8x8xf32>
    %115 = tpu.matmul %112, %113, %cst_40 {dimension_numbers = #tpu.dot_dimension_numbers<[1], [1], [0], [0], [0, 0, 1, 0], [], []>} : vector<8x4xf32>, vector<8x4xf32>, vector<8x8xf32> -> vector<8x8xf32>
    %cst_41 = arith.constant dense<0xFF800000> : vector<8xf32>
    %116 = vector.multi_reduction <maximumf>, %115, %cst_41 [1] : vector<8x8xf32> to vector<8xf32>
    %117 = vector.shape_cast %116 : vector<8xf32> to vector<8x1xf32>
    %118 = vector.broadcast %117 : vector<8x1xf32> to vector<8x8xf32>
    %119 = arith.subf %115, %118 : vector<8x8xf32>
    %120 = math.exp %119 : vector<8x8xf32>
    %cst_42 = arith.constant dense<0.000000e+00> : vector<8xf32>
    %121 = vector.multi_reduction <add>, %120, %cst_42 [1] : vector<8x8xf32> to vector<8xf32>
    %122 = vector.shape_cast %121 : vector<8xf32> to vector<8x1xf32>
    %cst_43 = arith.constant dense<0.000000e+00> : vector<8x4xf32>
    %123 = tpu.matmul %120, %114, %cst_43 {dimension_numbers = #tpu.dot_dimension_numbers<[1], [0], [0], [1], [0, 0, 1, 1], [], []>} : vector<8x8xf32>, vector<8x4xf32>, vector<8x4xf32> -> vector<8x4xf32>
    %124 = vector.broadcast %122 : vector<8x1xf32> to vector<8x4xf32>
    %125 = arith.divf %123, %124 : vector<8x4xf32>
    %c0_44 = arith.constant 0 : index
    %c28 = arith.constant 28 : index
    %126 = vector.load %arg6[%c0_44, %c28] : memref<16x32xf32, #tpu.memory_space<vmem>>, vector<8x4xf32>
    tpu.vector_store %arg6[%c0_44, %c28], %125 {strides = array<i32>} : memref<16x32xf32, #tpu.memory_space<vmem>>, vector<8x4xf32>,
    %127 = vector.extract_strided_slice %4 {offsets = [8, 0], sizes = [8, 4], strides = [1, 1]} : vector<16x32xf32> to vector<8x4xf32>
    %128 = vector.extract_strided_slice %5 {offsets = [8, 0], sizes = [8, 4], strides = [1, 1]} : vector<16x32xf32> to vector<8x4xf32>
    %129 = vector.extract_strided_slice %6 {offsets = [8, 0], sizes = [8, 4], strides = [1, 1]} : vector<16x32xf32> to vector<8x4xf32>
    %cst_45 = arith.constant dense<0.000000e+00> : vector<8x8xf32>
    %130 = tpu.matmul %127, %128, %cst_45 {dimension_numbers = #tpu.dot_dimension_numbers<[1], [1], [0], [0], [0, 0, 1, 0], [], []>} : vector<8x4xf32>, vector<8x4xf32>, vector<8x8xf32> -> vector<8x8xf32>
    %cst_46 = arith.constant dense<0xFF800000> : vector<8xf32>
    %131 = vector.multi_reduction <maximumf>, %130, %cst_46 [1] : vector<8x8xf32> to vector<8xf32>
    %132 = vector.shape_cast %131 : vector<8xf32> to vector<8x1xf32>
    %133 = vector.broadcast %132 : vector<8x1xf32> to vector<8x8xf32>
    %134 = arith.subf %130, %133 : vector<8x8xf32>
    %135 = math.exp %134 : vector<8x8xf32>
    %cst_47 = arith.constant dense<0.000000e+00> : vector<8xf32>
    %136 = vector.multi_reduction <add>, %135, %cst_47 [1] : vector<8x8xf32> to vector<8xf32>
    %137 = vector.shape_cast %136 : vector<8xf32> to vector<8x1xf32>
    %cst_48 = arith.constant dense<0.000000e+00> : vector<8x4xf32>
    %138 = tpu.matmul %135, %129, %cst_48 {dimension_numbers = #tpu.dot_dimension_numbers<[1], [0], [0], [1], [0, 0, 1, 1], [], []>} : vector<8x8xf32>, vector<8x4xf32>, vector<8x4xf32> -> vector<8x4xf32>
    %139 = vector.broadcast %137 : vector<8x1xf32> to vector<8x4xf32>
    %140 = arith.divf %138, %139 : vector<8x4xf32>
    %c8_49 = arith.constant 8 : index
    %c0_50 = arith.constant 0 : index
    %141 = vector.load %arg6[%c8_49, %c0_50] : memref<16x32xf32, #tpu.memory_space<vmem>>, vector<8x4xf32>
    tpu.vector_store %arg6[%c8_49, %c0_50], %140 {strides = array<i32>} : memref<16x32xf32, #tpu.memory_space<vmem>>, vector<8x4xf32>,
    %142 = vector.extract_strided_slice %4 {offsets = [8, 4], sizes = [8, 4], strides = [1, 1]} : vector<16x32xf32> to vector<8x4xf32>
    %143 = vector.extract_strided_slice %5 {offsets = [8, 4], sizes = [8, 4], strides = [1, 1]} : vector<16x32xf32> to vector<8x4xf32>
    %144 = vector.extract_strided_slice %6 {offsets = [8, 4], sizes = [8, 4], strides = [1, 1]} : vector<16x32xf32> to vector<8x4xf32>
    %cst_51 = arith.constant dense<0.000000e+00> : vector<8x8xf32>
    %145 = tpu.matmul %142, %143, %cst_51 {dimension_numbers = #tpu.dot_dimension_numbers<[1], [1], [0], [0], [0, 0, 1, 0], [], []>} : vector<8x4xf32>, vector<8x4xf32>, vector<8x8xf32> -> vector<8x8xf32>
    %cst_52 = arith.constant dense<0xFF800000> : vector<8xf32>
    %146 = vector.multi_reduction <maximumf>, %145, %cst_52 [1] : vector<8x8xf32> to vector<8xf32>
    %147 = vector.shape_cast %146 : vector<8xf32> to vector<8x1xf32>
    %148 = vector.broadcast %147 : vector<8x1xf32> to vector<8x8xf32>
    %149 = arith.subf %145, %148 : vector<8x8xf32>
    %150 = math.exp %149 : vector<8x8xf32>
    %cst_53 = arith.constant dense<0.000000e+00> : vector<8xf32>
    %151 = vector.multi_reduction <add>, %150, %cst_53 [1] : vector<8x8xf32> to vector<8xf32>
    %152 = vector.shape_cast %151 : vector<8xf32> to vector<8x1xf32>
    %cst_54 = arith.constant dense<0.000000e+00> : vector<8x4xf32>
    %153 = tpu.matmul %150, %144, %cst_54 {dimension_numbers = #tpu.dot_dimension_numbers<[1], [0], [0], [1], [0, 0, 1, 1], [], []>} : vector<8x8xf32>, vector<8x4xf32>, vector<8x4xf32> -> vector<8x4xf32>
    %154 = vector.broadcast %152 : vector<8x1xf32> to vector<8x4xf32>
    %155 = arith.divf %153, %154 : vector<8x4xf32>
    %c8_55 = arith.constant 8 : index
    %c4_56 = arith.constant 4 : index
    %156 = vector.load %arg6[%c8_55, %c4_56] : memref<16x32xf32, #tpu.memory_space<vmem>>, vector<8x4xf32>
    tpu.vector_store %arg6[%c8_55, %c4_56], %155 {strides = array<i32>} : memref<16x32xf32, #tpu.memory_space<vmem>>, vector<8x4xf32>,
    %157 = vector.extract_strided_slice %4 {offsets = [8, 8], sizes = [8, 4], strides = [1, 1]} : vector<16x32xf32> to vector<8x4xf32>
    %158 = vector.extract_strided_slice %5 {offsets = [8, 8], sizes = [8, 4], strides = [1, 1]} : vector<16x32xf32> to vector<8x4xf32>
    %159 = vector.extract_strided_slice %6 {offsets = [8, 8], sizes = [8, 4], strides = [1, 1]} : vector<16x32xf32> to vector<8x4xf32>
    %cst_57 = arith.constant dense<0.000000e+00> : vector<8x8xf32>
    %160 = tpu.matmul %157, %158, %cst_57 {dimension_numbers = #tpu.dot_dimension_numbers<[1], [1], [0], [0], [0, 0, 1, 0], [], []>} : vector<8x4xf32>, vector<8x4xf32>, vector<8x8xf32> -> vector<8x8xf32>
    %cst_58 = arith.constant dense<0xFF800000> : vector<8xf32>
    %161 = vector.multi_reduction <maximumf>, %160, %cst_58 [1] : vector<8x8xf32> to vector<8xf32>
    %162 = vector.shape_cast %161 : vector<8xf32> to vector<8x1xf32>
    %163 = vector.broadcast %162 : vector<8x1xf32> to vector<8x8xf32>
    %164 = arith.subf %160, %163 : vector<8x8xf32>
    %165 = math.exp %164 : vector<8x8xf32>
    %cst_59 = arith.constant dense<0.000000e+00> : vector<8xf32>
    %166 = vector.multi_reduction <add>, %165, %cst_59 [1] : vector<8x8xf32> to vector<8xf32>
    %167 = vector.shape_cast %166 : vector<8xf32> to vector<8x1xf32>
    %cst_60 = arith.constant dense<0.000000e+00> : vector<8x4xf32>
    %168 = tpu.matmul %165, %159, %cst_60 {dimension_numbers = #tpu.dot_dimension_numbers<[1], [0], [0], [1], [0, 0, 1, 1], [], []>} : vector<8x8xf32>, vector<8x4xf32>, vector<8x4xf32> -> vector<8x4xf32>
    %169 = vector.broadcast %167 : vector<8x1xf32> to vector<8x4xf32>
    %170 = arith.divf %168, %169 : vector<8x4xf32>
    %c8_61 = arith.constant 8 : index
    %c8_62 = arith.constant 8 : index
    %171 = vector.load %arg6[%c8_61, %c8_62] : memref<16x32xf32, #tpu.memory_space<vmem>>, vector<8x4xf32>
    tpu.vector_store %arg6[%c8_61, %c8_62], %170 {strides = array<i32>} : memref<16x32xf32, #tpu.memory_space<vmem>>, vector<8x4xf32>,
    %172 = vector.extract_strided_slice %4 {offsets = [8, 12], sizes = [8, 4], strides = [1, 1]} : vector<16x32xf32> to vector<8x4xf32>
    %173 = vector.extract_strided_slice %5 {offsets = [8, 12], sizes = [8, 4], strides = [1, 1]} : vector<16x32xf32> to vector<8x4xf32>
    %174 = vector.extract_strided_slice %6 {offsets = [8, 12], sizes = [8, 4], strides = [1, 1]} : vector<16x32xf32> to vector<8x4xf32>
    %cst_63 = arith.constant dense<0.000000e+00> : vector<8x8xf32>
    %175 = tpu.matmul %172, %173, %cst_63 {dimension_numbers = #tpu.dot_dimension_numbers<[1], [1], [0], [0], [0, 0, 1, 0], [], []>} : vector<8x4xf32>, vector<8x4xf32>, vector<8x8xf32> -> vector<8x8xf32>
    %cst_64 = arith.constant dense<0xFF800000> : vector<8xf32>
    %176 = vector.multi_reduction <maximumf>, %175, %cst_64 [1] : vector<8x8xf32> to vector<8xf32>
    %177 = vector.shape_cast %176 : vector<8xf32> to vector<8x1xf32>
    %178 = vector.broadcast %177 : vector<8x1xf32> to vector<8x8xf32>
    %179 = arith.subf %175, %178 : vector<8x8xf32>
    %180 = math.exp %179 : vector<8x8xf32>
    %cst_65 = arith.constant dense<0.000000e+00> : vector<8xf32>
    %181 = vector.multi_reduction <add>, %180, %cst_65 [1] : vector<8x8xf32> to vector<8xf32>
    %182 = vector.shape_cast %181 : vector<8xf32> to vector<8x1xf32>
    %cst_66 = arith.constant dense<0.000000e+00> : vector<8x4xf32>
    %183 = tpu.matmul %180, %174, %cst_66 {dimension_numbers = #tpu.dot_dimension_numbers<[1], [0], [0], [1], [0, 0, 1, 1], [], []>} : vector<8x8xf32>, vector<8x4xf32>, vector<8x4xf32> -> vector<8x4xf32>
    %184 = vector.broadcast %182 : vector<8x1xf32> to vector<8x4xf32>
    %185 = arith.divf %183, %184 : vector<8x4xf32>
    %c8_67 = arith.constant 8 : index
    %c12_68 = arith.constant 12 : index
    %186 = vector.load %arg6[%c8_67, %c12_68] : memref<16x32xf32, #tpu.memory_space<vmem>>, vector<8x4xf32>
    tpu.vector_store %arg6[%c8_67, %c12_68], %185 {strides = array<i32>} : memref<16x32xf32, #tpu.memory_space<vmem>>, vector<8x4xf32>,
    %187 = vector.extract_strided_slice %4 {offsets = [8, 16], sizes = [8, 4], strides = [1, 1]} : vector<16x32xf32> to vector<8x4xf32>
    %188 = vector.extract_strided_slice %5 {offsets = [8, 16], sizes = [8, 4], strides = [1, 1]} : vector<16x32xf32> to vector<8x4xf32>
    %189 = vector.extract_strided_slice %6 {offsets = [8, 16], sizes = [8, 4], strides = [1, 1]} : vector<16x32xf32> to vector<8x4xf32>
    %cst_69 = arith.constant dense<0.000000e+00> : vector<8x8xf32>
    %190 = tpu.matmul %187, %188, %cst_69 {dimension_numbers = #tpu.dot_dimension_numbers<[1], [1], [0], [0], [0, 0, 1, 0], [], []>} : vector<8x4xf32>, vector<8x4xf32>, vector<8x8xf32> -> vector<8x8xf32>
    %cst_70 = arith.constant dense<0xFF800000> : vector<8xf32>
    %191 = vector.multi_reduction <maximumf>, %190, %cst_70 [1] : vector<8x8xf32> to vector<8xf32>
    %192 = vector.shape_cast %191 : vector<8xf32> to vector<8x1xf32>
    %193 = vector.broadcast %192 : vector<8x1xf32> to vector<8x8xf32>
    %194 = arith.subf %190, %193 : vector<8x8xf32>
    %195 = math.exp %194 : vector<8x8xf32>
    %cst_71 = arith.constant dense<0.000000e+00> : vector<8xf32>
    %196 = vector.multi_reduction <add>, %195, %cst_71 [1] : vector<8x8xf32> to vector<8xf32>
    %197 = vector.shape_cast %196 : vector<8xf32> to vector<8x1xf32>
    %cst_72 = arith.constant dense<0.000000e+00> : vector<8x4xf32>
    %198 = tpu.matmul %195, %189, %cst_72 {dimension_numbers = #tpu.dot_dimension_numbers<[1], [0], [0], [1], [0, 0, 1, 1], [], []>} : vector<8x8xf32>, vector<8x4xf32>, vector<8x4xf32> -> vector<8x4xf32>
    %199 = vector.broadcast %197 : vector<8x1xf32> to vector<8x4xf32>
    %200 = arith.divf %198, %199 : vector<8x4xf32>
    %c8_73 = arith.constant 8 : index
    %c16_74 = arith.constant 16 : index
    %201 = vector.load %arg6[%c8_73, %c16_74] : memref<16x32xf32, #tpu.memory_space<vmem>>, vector<8x4xf32>
    tpu.vector_store %arg6[%c8_73, %c16_74], %200 {strides = array<i32>} : memref<16x32xf32, #tpu.memory_space<vmem>>, vector<8x4xf32>,
    %202 = vector.extract_strided_slice %4 {offsets = [8, 20], sizes = [8, 4], strides = [1, 1]} : vector<16x32xf32> to vector<8x4xf32>
    %203 = vector.extract_strided_slice %5 {offsets = [8, 20], sizes = [8, 4], strides = [1, 1]} : vector<16x32xf32> to vector<8x4xf32>
    %204 = vector.extract_strided_slice %6 {offsets = [8, 20], sizes = [8, 4], strides = [1, 1]} : vector<16x32xf32> to vector<8x4xf32>
    %cst_75 = arith.constant dense<0.000000e+00> : vector<8x8xf32>
    %205 = tpu.matmul %202, %203, %cst_75 {dimension_numbers = #tpu.dot_dimension_numbers<[1], [1], [0], [0], [0, 0, 1, 0], [], []>} : vector<8x4xf32>, vector<8x4xf32>, vector<8x8xf32> -> vector<8x8xf32>
    %cst_76 = arith.constant dense<0xFF800000> : vector<8xf32>
    %206 = vector.multi_reduction <maximumf>, %205, %cst_76 [1] : vector<8x8xf32> to vector<8xf32>
    %207 = vector.shape_cast %206 : vector<8xf32> to vector<8x1xf32>
    %208 = vector.broadcast %207 : vector<8x1xf32> to vector<8x8xf32>
    %209 = arith.subf %205, %208 : vector<8x8xf32>
    %210 = math.exp %209 : vector<8x8xf32>
    %cst_77 = arith.constant dense<0.000000e+00> : vector<8xf32>
    %211 = vector.multi_reduction <add>, %210, %cst_77 [1] : vector<8x8xf32> to vector<8xf32>
    %212 = vector.shape_cast %211 : vector<8xf32> to vector<8x1xf32>
    %cst_78 = arith.constant dense<0.000000e+00> : vector<8x4xf32>
    %213 = tpu.matmul %210, %204, %cst_78 {dimension_numbers = #tpu.dot_dimension_numbers<[1], [0], [0], [1], [0, 0, 1, 1], [], []>} : vector<8x8xf32>, vector<8x4xf32>, vector<8x4xf32> -> vector<8x4xf32>
    %214 = vector.broadcast %212 : vector<8x1xf32> to vector<8x4xf32>
    %215 = arith.divf %213, %214 : vector<8x4xf32>
    %c8_79 = arith.constant 8 : index
    %c20_80 = arith.constant 20 : index
    %216 = vector.load %arg6[%c8_79, %c20_80] : memref<16x32xf32, #tpu.memory_space<vmem>>, vector<8x4xf32>
    tpu.vector_store %arg6[%c8_79, %c20_80], %215 {strides = array<i32>} : memref<16x32xf32, #tpu.memory_space<vmem>>, vector<8x4xf32>,
    %217 = vector.extract_strided_slice %4 {offsets = [8, 24], sizes = [8, 4], strides = [1, 1]} : vector<16x32xf32> to vector<8x4xf32>
    %218 = vector.extract_strided_slice %5 {offsets = [8, 24], sizes = [8, 4], strides = [1, 1]} : vector<16x32xf32> to vector<8x4xf32>
    %219 = vector.extract_strided_slice %6 {offsets = [8, 24], sizes = [8, 4], strides = [1, 1]} : vector<16x32xf32> to vector<8x4xf32>
    %cst_81 = arith.constant dense<0.000000e+00> : vector<8x8xf32>
    %220 = tpu.matmul %217, %218, %cst_81 {dimension_numbers = #tpu.dot_dimension_numbers<[1], [1], [0], [0], [0, 0, 1, 0], [], []>} : vector<8x4xf32>, vector<8x4xf32>, vector<8x8xf32> -> vector<8x8xf32>
    %cst_82 = arith.constant dense<0xFF800000> : vector<8xf32>
    %221 = vector.multi_reduction <maximumf>, %220, %cst_82 [1] : vector<8x8xf32> to vector<8xf32>
    %222 = vector.shape_cast %221 : vector<8xf32> to vector<8x1xf32>
    %223 = vector.broadcast %222 : vector<8x1xf32> to vector<8x8xf32>
    %224 = arith.subf %220, %223 : vector<8x8xf32>
    %225 = math.exp %224 : vector<8x8xf32>
    %cst_83 = arith.constant dense<0.000000e+00> : vector<8xf32>
    %226 = vector.multi_reduction <add>, %225, %cst_83 [1] : vector<8x8xf32> to vector<8xf32>
    %227 = vector.shape_cast %226 : vector<8xf32> to vector<8x1xf32>
    %cst_84 = arith.constant dense<0.000000e+00> : vector<8x4xf32>
    %228 = tpu.matmul %225, %219, %cst_84 {dimension_numbers = #tpu.dot_dimension_numbers<[1], [0], [0], [1], [0, 0, 1, 1], [], []>} : vector<8x8xf32>, vector<8x4xf32>, vector<8x4xf32> -> vector<8x4xf32>
    %229 = vector.broadcast %227 : vector<8x1xf32> to vector<8x4xf32>
    %230 = arith.divf %228, %229 : vector<8x4xf32>
    %c8_85 = arith.constant 8 : index
    %c24_86 = arith.constant 24 : index
    %231 = vector.load %arg6[%c8_85, %c24_86] : memref<16x32xf32, #tpu.memory_space<vmem>>, vector<8x4xf32>
    tpu.vector_store %arg6[%c8_85, %c24_86], %230 {strides = array<i32>} : memref<16x32xf32, #tpu.memory_space<vmem>>, vector<8x4xf32>,
    %232 = vector.extract_strided_slice %4 {offsets = [8, 28], sizes = [8, 4], strides = [1, 1]} : vector<16x32xf32> to vector<8x4xf32>
    %233 = vector.extract_strided_slice %5 {offsets = [8, 28], sizes = [8, 4], strides = [1, 1]} : vector<16x32xf32> to vector<8x4xf32>
    %234 = vector.extract_strided_slice %6 {offsets = [8, 28], sizes = [8, 4], strides = [1, 1]} : vector<16x32xf32> to vector<8x4xf32>
    %cst_87 = arith.constant dense<0.000000e+00> : vector<8x8xf32>
    %235 = tpu.matmul %232, %233, %cst_87 {dimension_numbers = #tpu.dot_dimension_numbers<[1], [1], [0], [0], [0, 0, 1, 0], [], []>} : vector<8x4xf32>, vector<8x4xf32>, vector<8x8xf32> -> vector<8x8xf32>
    %cst_88 = arith.constant dense<0xFF800000> : vector<8xf32>
    %236 = vector.multi_reduction <maximumf>, %235, %cst_88 [1] : vector<8x8xf32> to vector<8xf32>
    %237 = vector.shape_cast %236 : vector<8xf32> to vector<8x1xf32>
    %238 = vector.broadcast %237 : vector<8x1xf32> to vector<8x8xf32>
    %239 = arith.subf %235, %238 : vector<8x8xf32>
    %240 = math.exp %239 : vector<8x8xf32>
    %cst_89 = arith.constant dense<0.000000e+00> : vector<8xf32>
    %241 = vector.multi_reduction <add>, %240, %cst_89 [1] : vector<8x8xf32> to vector<8xf32>
    %242 = vector.shape_cast %241 : vector<8xf32> to vector<8x1xf32>
    %cst_90 = arith.constant dense<0.000000e+00> : vector<8x4xf32>
    %243 = tpu.matmul %240, %234, %cst_90 {dimension_numbers = #tpu.dot_dimension_numbers<[1], [0], [0], [1], [0, 0, 1, 1], [], []>} : vector<8x8xf32>, vector<8x4xf32>, vector<8x4xf32> -> vector<8x4xf32>
    %244 = vector.broadcast %242 : vector<8x1xf32> to vector<8x4xf32>
    %245 = arith.divf %243, %244 : vector<8x4xf32>
    %c8_91 = arith.constant 8 : index
    %c28_92 = arith.constant 28 : index
    %246 = vector.load %arg6[%c8_91, %c28_92] : memref<16x32xf32, #tpu.memory_space<vmem>>, vector<8x4xf32>
    tpu.vector_store %arg6[%c8_91, %c28_92], %245 {strides = array<i32>} : memref<16x32xf32, #tpu.memory_space<vmem>>, vector<8x4xf32>,
    %c0_93 = arith.constant 0 : index
    %c0_94 = arith.constant 0 : index
    %247 = vector.load %arg6[%c0_93, %c0_94] : memref<16x32xf32, #tpu.memory_space<vmem>>, vector<16x32xf32>
    %c0_95 = arith.constant 0 : index
    %c0_96 = arith.constant 0 : index
    %248 = vector.load %arg3[%c0_95, %c0_96] : memref<32x32xf32, #tpu.memory_space<vmem>>, vector<32x32xf32>
    %cst_97 = arith.constant dense<0.000000e+00> : vector<16x32xf32>
    %249 = tpu.matmul %247, %248, %cst_97 {dimension_numbers = #tpu.dot_dimension_numbers<[1], [0], [0], [1], [0, 0, 1, 1], [], []>} : vector<16x32xf32>, vector<32x32xf32>, vector<16x32xf32> -> vector<16x32xf32>
    %c0_98 = arith.constant 0 : index
    %c0_99 = arith.constant 0 : index
    %250 = vector.load %arg4[%c0_98, %c0_99] : memref<1x32xf32, #tpu.memory_space<vmem>>, vector<1x32xf32>
    %251 = vector.broadcast %250 : vector<1x32xf32> to vector<16x32xf32>
    %252 = arith.addf %249, %251 : vector<16x32xf32>
    %253 = vector.shape_cast %252 : vector<16x32xf32> to vector<2x8x32xf32>
    %c0_100 = arith.constant 0 : index
    %c0_101 = arith.constant 0 : index
    %c0_102 = arith.constant 0 : index
    %254 = vector.load %arg5[%c0_100, %c0_101, %c0_102] : memref<2x8x32xf32, #tpu.memory_space<vmem>>, vector<2x8x32xf32>
    tpu.vector_store %arg5[%c0_100, %c0_101, %c0_102], %253 {strides = array<i32>} : memref<2x8x32xf32, #tpu.memory_space<vmem>>, vector<2x8x32xf32>,
    return
  }
  func.func @transform_0(%arg0: i32) -> (i32, i32, i32) {
    %c0_i32 = arith.constant 0 : i32
    %c0_i32_0 = arith.constant 0 : i32
    %c0_i32_1 = arith.constant 0 : i32
    return %arg0, %c0_i32, %c0_i32_0 : i32, i32, i32
  }
  func.func @transform_1(%arg0: i32) -> (i32, i32) {
    %c0_i32 = arith.constant 0 : i32
    %c0_i32_0 = arith.constant 0 : i32
    %c0_i32_1 = arith.constant 0 : i32
    return %c0_i32, %c0_i32_0 : i32, i32
  }
  func.func @transform_2(%arg0: i32) -> (i32, i32) {
    %c0_i32 = arith.constant 0 : i32
    %c0_i32_0 = arith.constant 0 : i32
    %c0_i32_1 = arith.constant 0 : i32
    return %c0_i32, %c0_i32_0 : i32, i32
  }
  func.func @transform_3(%arg0: i32) -> (i32, i32) {
    %c0_i32 = arith.constant 0 : i32
    %c0_i32_0 = arith.constant 0 : i32
    %c0_i32_1 = arith.constant 0 : i32
    return %c0_i32, %c0_i32_0 : i32, i32
  }
  func.func @transform_4(%arg0: i32) -> (i32, i32, i32) {
    %c0_i32 = arith.constant 0 : i32
    %c0_i32_0 = arith.constant 0 : i32
    %c0_i32_1 = arith.constant 0 : i32
    return %arg0, %c0_i32, %c0_i32_0 : i32, i32, i32
  }
}

</mosaic_0001>

<bundles_post_ra>
// kernel: tpu_custom_call.1
= control target key start
LH: loop header
LB: loop body
LE: loop exit
PB: predicated region body
PF: predicated region fallthrough
CT: control target
= control target key end

     0   :  { %9 = vsyncpa [#allocation4], 0  ;;  %s2180_s0 = inlined_call_operand.hbm [shape: f32[2,8,32], index: 0, kind: input, shape index: {}]   ;;  %s2181_s1 = inlined_call_operand.hbm [shape: f32[32,96], index: 1, kind: input, shape index: {}]   ;;  %s2182_s2 = inlined_call_operand.hbm [shape: f32[32,32], index: 2, kind: input, shape index: {}]   ;;  %s2183_s3 = inlined_call_operand.vmem [shape: f32[1,32], index: 3, kind: input, shape index: {}]   ;;  %s2184_s4 = inlined_call_operand.hbm [shape: f32[2,8,32], index: 4, kind: output, shape index: {}]  }
   0x1   :  { %10 = vsyncpa [#allocation7], 0 }
   0x2   :  { %11 = vsyncpa [#allocation5], 0  ;;  %s29_s17 = sshll.u32 %s2181_s1, 4  ;;  %s1743_s18 = smov [#allocation6]   ;;  %s30_s17 = int_to_ptr.hbm [resolvable:$true] %s29_s17 }
   0x3   :  { %s31_s19 = sshll.u32 %s1743_s18, 4  ;;  %s16_s22 = sshll.u32 %s2180_s0, 4  ;;  %s32_s19 = int_to_ptr.vmem [resolvable:$true] %s31_s19  ;;  %s17_s22 = int_to_ptr.hbm [resolvable:$true] %s16_s22 }
   0x4   :  { %s1744_s23 = smov 128   ;;  %s1745_s24 = smov 8  }
   0x5   :  { %37 = dma.hbm_to_vmem [thread:$0]  %s30_s17, 512, %s32_s19, [#allocation7], %s1744_s23, %s1744_s23, %s1745_s24  }
   0x6   :  { %s1746_s25 = smov [#allocation3]   ;;  %s42_s1 = sshll.u32 %s2182_s2, 4  ;;  %s43_s1 = int_to_ptr.hbm [resolvable:$true] %s42_s1 }
   0x7   :  { %s18_s26 = sshll.u32 %s1746_s25, 4  ;;  %s1747_s0 = smov [#allocation8]   ;;  %s19_s26 = int_to_ptr.vmem [resolvable:$true] %s18_s26 }
   0x8   :  { %24 = dma.hbm_to_vmem [thread:$0]  %s17_s22, 256, %s19_s26, [#allocation4], %s1744_s23, %s1744_s23, %s1745_s24  }
   0x9   :  { %s44_s29 = sshll.u32 %s1747_s0, 4  ;;  %s45_s29 = int_to_ptr.vmem [resolvable:$true] %s44_s29 }
   0xa   :  { %50 = dma.hbm_to_vmem [thread:$0]  %s43_s1, 512, %s45_s29, [#allocation7], %s1744_s23, %s1744_s23, %s1745_s24  }
   0xb   :  { %1737 = dma.done.wait [#allocation4], 256  }
   0xc   :  { %1738 = vsyncadd [#allocation4], 4294967040 }
   0xd   :  { %1739 = dma.done.wait [#allocation7], 1024  }
   0xe   :  { %1740 = vsyncadd [#allocation7], 4294966272  ;;  %v70_v0 = vld [vmem:[#allocation6 + $0x18] sm:$0xff]  ;;  %v69_v1 = vld [vmem:[#allocation6 + $0x10] sm:$0xff]  ;;  %vm71_vm0 = vcmask 261120   ;;  %s1748_s2 = smov 120  }
   0xf   :  { %90 = vmatpush.msra.mxu0 %v70_v0  ;;  %v68_v2 = vld [vmem:[#allocation6 + $0x8] sm:$0xff]  ;;  %v67_v3 = vld [vmem:[#allocation6] sm:$0xff]  ;;  %v65_v4 = vld [vmem:[#allocation3] sm:$0xff]  ;;  %s1749_s30 = smov 124   ;;  %s1750_s5 = smov 96   ;;  %vm104_vm1 = vcmask 31744  }
  0x10   :  { %s1751_s6 = smov 60   ;;  %s1752_s7 = smov 88   ;;  %v66_v6 = vld [vmem:[#allocation3 + $0x8] sm:$0xff]  ;;  %vm129_vm2 = vcmask 64512  }
  0x11   :  { %91 = vmatpush.msra.mxu0 %v69_v1  ;;  %s1753_s8 = smov 92   ;;  %s1754_s9 = smov 116  }
  0x12   :  { %s1755_s10 = smov 64   ;;  %s1756_s11 = smov 84  }
  0x13   :  { %92 = vmatpush.msra.mxu0 %v68_v2  ;;  %s1757_s12 = smov 76   ;;  %s1758_s13 = smov 56  }
  0x14   :  { %s1759_s14 = smov 80   ;;  %s1760_s15 = smov 108  }
  0x15   :  { %93 = vmatpush.msra.mxu0 %v67_v3  ;;  %s1761_s16 = smov 72   ;;  %s1762_s17 = smov 112  }
  0x16   :  { %1489 = vmatmul.msk.f32.vlgmr.msra.gmra.mxu0 %vm71_vm0, %v65_v4  ;;  %s1763_s18 = smov 100   ;;  %s1764_s19 = smov 68  }
  0x17   :  { %s1765_s20 = smov 104   ;;  %s1766_s21 = smov 52  }
  0x18   :  { %s1767_s22 = smov 44   ;;  %s1768_s25 = smov 48  }
  0x19   :  { %s1769_s26 = smov 40   ;;  %s1770_s27 = smov 36  }
  0x1a   :  { %s1771_s28 = smov 4   ;;  %s1772_s1 = smov 12  }
  0x1b   :  { %s1773_s0 = smov 16   ;;  %s1774_s29 = smov 20  }
  0x1e   :  { %1490 = vmatmul.msk.f32.gmra.mxu0 %vm71_vm0, %v66_v6 }
  0x93   :  { %v1822_v5 = vpop.f32.mrf.mxu0 }
  0x94   :  { %265 = vrot.lane.b32.xlu2 %v1822_v5, %s1748_s2  ;;  %181 = vrot.lane.b32.xlu1 %v1822_v5, %s1749_s30 }
  0x95   :  { %102 = vrot.lane.b32.xlu0 %v1822_v5, %s1750_s5 }
  0x9b   :  { %v1868_v15 = vpop.f32.mrf.mxu0 }
  0x9c   :  { %218 = vrot.lane.b32.xlu2 %v1822_v5, %s1751_s6  ;;  %267 = vrot.lane.b32.xlu1 %v1822_v5, %s1752_s7 }
  0x9d   :  { %183 = vrot.lane.b32.xlu0 %v1822_v5, %s1753_s8 }
  0xa4   :  { %349 = vrot.lane.b32.xlu2 %v1822_v5, %s1754_s9  ;;  %139 = vrot.lane.b32.xlu1 %v1822_v5, %s1755_s10 }
  0xa5   :  { %351 = vrot.lane.b32.xlu0 %v1822_v5, %s1756_s11 }
  0xac   :  { %519 = vrot.lane.b32.xlu2 %v1822_v5, %s1757_s12  ;;  %302 = vrot.lane.b32.xlu1 %v1822_v5, %s1758_s13 }
  0xad   :  { %435 = vrot.lane.b32.xlu0 %v1822_v5, %s1759_s14 }
  0xb4   :  { %517 = vrot.lane.b32.xlu2 %v1822_v5, %s1760_s15  ;;  %603 = vrot.lane.b32.xlu1 %v1822_v5, %s1761_s16 }
  0xb5   :  { %433 = vrot.lane.b32.xlu0 %v1822_v5, %s1762_s17 }
  0xbc   :  { %685 = vrot.lane.b32.xlu1 %v1822_v5, %s1763_s18 }
  0xbd   :  { %687 = vrot.lane.b32.xlu0 %v1822_v5, %s1764_s19 }
  0xc4   :  { %847 = vrot.lane.b32.xlu1 %v1868_v15, %s1749_s30  ;;  %s1776_s30 = smov 28  }
  0xc5   :  { %770 = vrot.lane.b32.xlu0 %v1868_v15, %s1750_s5 }
  0xee   :  { %v266_v9 = vpop.permute.xlu2 %265 }
  0xf6   :  { %v219_v13 = vpop.permute.xlu2 %218 }
  0xfe   :  { %v350_v24 = vpop.permute.xlu2 %349 }
 0x106   :  { %v182_v7 = vpop.permute.xlu1 %181  ;;  %v520_v25 = vpop.permute.xlu2 %519 }
 0x107   :  { %v103_v8 = vpop.permute.xlu0 %102 }
 0x108   :  { %1491 = vmatpush.xpose.msk.msra.mxu1 %vm104_vm1, %v103_v8 }
 0x10b   :  { %1492 = vmatmul.msk.f32.vlgmr.msra.gmra.mxu1 %vm104_vm1, %v1822_v5 }
 0x10e   :  { %v268_v10 = vpop.permute.xlu1 %267  ;;  %v518_v28 = vpop.permute.xlu2 %517 }
 0x10f   :  { %v184_v11 = vpop.permute.xlu0 %183  ;;  %1497 = vmatpush.xpose.msk.msrb.mxu1 %vm104_vm1, %v268_v10 }
 0x110   :  { %1494 = vmatpush.xpose.msk.msrb.mxu0 %vm104_vm1, %v184_v11 }
 0x113   :  { %1495 = vmatmul.msk.f32.vlgmr.msrb.gmra.mxu0 %vm104_vm1, %v182_v7  ;;  %1498 = vmatmul.msk.f32.vlgmr.msrb.gmra.mxu1 %vm104_vm1, %v266_v9 }
 0x116   :  { %v140_v12 = vpop.permute.xlu1 %139 }
 0x117   :  { %v1866_v14 = vpop.permute.xlu0 %351  ;;  %160 = vmatpush.msra.mxu2 %v140_v12 }
 0x119   :  { %239 = vmatpush.msrb.mxu2 %v219_v13 }
 0x11e   :  { %v303_v16 = vpop.permute.xlu1 %302 }
 0x11f   :  { %v436_v17 = vpop.permute.xlu0 %435  ;;  %323 = vmatpush.msra.mxu3 %v303_v16 }
 0x121   :  { %1503 = vmatpush.xpose.msk.msrb.mxu3 %vm104_vm1, %v436_v17 }
 0x126   :  { %v604_v26 = vpop.permute.xlu1 %603 }
 0x127   :  { %v434_v27 = vpop.permute.xlu0 %433 }
 0x12e   :  { %v686_v29 = vpop.permute.xlu1 %685 }
 0x12f   :  { %v688_v30 = vpop.permute.xlu0 %687 }
 0x136   :  { %v848_v31 = vpop.permute.xlu1 %847 }
 0x137   :  { %v771_v33 = vpop.permute.xlu0 %770 }
 0x188   :  { %v126_v18 = vpop.f32.mrf.mxu1 }
 0x189   :  { %v130_v19 = vsel %vm129_vm2, %v126_v18, -inf }
 0x18a   :  { %131 = vmax.xlane.f32.xlu2 %v130_v19 }
 0x190   :  { %v206_v20 = vpop.f32.mrf.mxu0  ;;  %v290_v21 = vpop.f32.mrf.mxu1 }
 0x191   :  { %v293_v22 = vsel %vm129_vm2, %v290_v21, -inf  ;;  %v209_v23 = vsel %vm129_vm2, %v206_v20, -inf }
 0x192   :  { %294 = vmax.xlane.f32.xlu1 %v293_v22  ;;  %210 = vmax.xlane.f32.xlu0 %v209_v23 }
 0x1a2   :  { %601 = vrot.lane.b32.xlu2 %v1822_v5, %s1765_s20 }
 0x1a6   :  { %932 = vrot.lane.b32.xlu0 %v1868_v15, %s1752_s7  ;;  %s1777_s7 = smov [#allocation9]  }
 0x1aa   :  { %849 = vrot.lane.b32.xlu2 %v1868_v15, %s1753_s8  ;;  %s1473_s8 = sshll.u32 %s1777_s7, 4  ;;  %s1474_s8 = int_to_ptr.vmem [resolvable:$true] %s1473_s8 }
 0x1ab   :  { %930 = vrot.lane.b32.xlu1 %v1868_v15, %s1748_s2  ;;  %s1775_s2 = smov 24  }
 0x1ae   :  { %1013 = vrot.lane.b32.xlu0 %v1868_v15, %s1754_s9 }
 0x1b2   :  { %1015 = vrot.lane.b32.xlu2 %v1868_v15, %s1756_s11  ;;  %s1475_s11 = sshll.u32 %s2184_s4, 4  ;;  %s1476_s11 = int_to_ptr.hbm [resolvable:$true] %s1475_s11 }
 0x1b3   :  { %1181 = vrot.lane.b32.xlu1 %v1868_v15, %s1757_s12 }
 0x1b6   :  { %1096 = vrot.lane.b32.xlu0 %v1868_v15, %s1762_s17 }
 0x1ba   :  { %1098 = vrot.lane.b32.xlu2 %v1868_v15, %s1759_s14 }
 0x1bb   :  { %1264 = vrot.lane.b32.xlu1 %v1868_v15, %s1761_s16 }
 0x1be   :  { %1347 = vrot.lane.b32.xlu0 %v1868_v15, %s1764_s19 }
 0x1c2   :  { %1179 = vrot.lane.b32.xlu2 %v1868_v15, %s1760_s15 }
 0x1c3   :  { %1345 = vrot.lane.b32.xlu1 %v1868_v15, %s1763_s18 }
 0x1c6   :  { %386 = vrot.lane.b32.xlu0 %v1822_v5, %s1766_s21 }
 0x1ca   :  { %1262 = vrot.lane.b32.xlu2 %v1868_v15, %s1765_s20 }
 0x1cb   :  { %554 = vrot.lane.b32.xlu1 %v1822_v5, %s1767_s22 }
 0x1ce   :  { %805 = vrot.lane.b32.xlu0 %v1868_v15, %s1755_s10 }
 0x1d2   :  { %470 = vrot.lane.b32.xlu2 %v1822_v5, %s1768_s25 }
 0x1d3   :  { %638 = vrot.lane.b32.xlu1 %v1822_v5, %s1769_s26 }
 0x1d6   :  { %1133 = vrot.lane.b32.xlu0 %v1868_v15, %s1768_s25 }
 0x1da   :  { %884 = vrot.lane.b32.xlu2 %v1868_v15, %s1751_s6 }
 0x1db   :  { %722 = vrot.lane.b32.xlu1 %v1822_v5, %s1770_s27 }
 0x1e2   :  { %967 = vrot.lane.b32.xlu2 %v1868_v15, %s1758_s13 }
 0x1e3   :  { %1050 = vrot.lane.b32.xlu1 %v1868_v15, %s1766_s21 }
 0x1fd   :  { %v132_v32 = vpop.xlane.xlu2 %131 }
 0x1fe   :  { %v133_v34 = vsub.f32 %v126_v18, %v132_v32 }
 0x200   :  { %v134_v35 = vmul.f32 1.442695, %v133_v34 }
 0x202   :  { %1577 = vpow2.f32 %v134_v35 }
 0x205   :  { %v602_v36 = vpop.permute.xlu2 %601  ;;  %v295_v37 = vpop.xlane.xlu1 %294 }
 0x206   :  { %v296_v38 = vsub.f32 %v290_v21, %v295_v37  ;;  %v211_v39 = vpop.xlane.xlu0 %210 }
 0x207   :  { %v212_v40 = vsub.f32 %v206_v20, %v211_v39 }
 0x208   :  { %v1920_v41 = vpop.eup %1577  ;;  %v297_v42 = vmul.f32 1.442695, %v296_v38 }
 0x209   :  { %v213_v43 = vmul.f32 1.442695, %v212_v40  ;;  %1493 = vmatmul.msk.f32.vlgmr.msra.gmra.mxu2 %vm129_vm2, %v1920_v41 }
 0x20a   :  { %1579 = vpow2.f32 %v297_v42  ;;  %1500 = vmatpush.xpose.msk.msra.mxu2 %vm104_vm1, %v1866_v14 }
 0x20b   :  { %1581 = vpow2.f32 %v213_v43 }
 0x20d   :  { %v850_v44 = vpop.permute.xlu2 %849 }
 0x210   :  { %v1926_v45 = vpop.eup %1579 }
 0x211   :  { %v1928_v46 = vpop.eup %1581  ;;  %1499 = vmatmul.msk.f32.vlgmr.msra.gmra.mxu3 %vm129_vm2, %v1926_v45 }
 0x212   :  { %1496 = vmatmul.msk.f32.vlgmr.msrb.gmra.mxu2 %vm129_vm2, %v1928_v46  ;;  %1509 = vmatpush.xpose.msk.msra.mxu3 %vm104_vm1, %v604_v26 }
 0x213   :  { %1506 = vmatpush.xpose.msk.msrb.mxu2 %vm104_vm1, %v520_v25 }
 0x215   :  { %v1016_v47 = vpop.permute.xlu2 %1015 }
 0x218   :  { %v933_v48 = vpop.permute.xlu0 %932 }
 0x219   :  { %1504 = vmatmul.msk.f32.vlgmr.msrb.gmra.mxu3 %vm104_vm1, %v434_v27  ;;  %v299_v27 = vsel %vm129_vm2, %v1926_v45, 0.0 }
 0x21a   :  { %1501 = vmatmul.msk.f32.vlgmr.msra.gmra.mxu2 %vm104_vm1, %v350_v24  ;;  %1515 = vmatpush.xpose.msk.msrb.mxu3 %vm104_vm1, %v771_v33 }
 0x21b   :  { %1512 = vmatpush.xpose.msk.msra.mxu2 %vm104_vm1, %v688_v30  ;;  %v136_v30 = vsel %vm129_vm2, %v1920_v41, 0.0 }
 0x21d   :  { %v931_v49 = vpop.permute.xlu1 %930  ;;  %v1099_v50 = vpop.permute.xlu2 %1098 }
 0x220   :  { %v1014_v51 = vpop.permute.xlu0 %1013 }
 0x221   :  { %1510 = vmatmul.msk.f32.vlgmr.msra.gmra.mxu3 %vm104_vm1, %v602_v36  ;;  %v215_v36 = vsel %vm129_vm2, %v1928_v46, 0.0 }
 0x222   :  { %1507 = vmatmul.msk.f32.vlgmr.msrb.gmra.mxu2 %vm104_vm1, %v518_v28  ;;  %1521 = vmatpush.xpose.msk.msra.mxu3 %vm104_vm1, %v933_v48 }
 0x223   :  { %1518 = vmatpush.xpose.msk.msrb.mxu2 %vm104_vm1, %v850_v44 }
 0x225   :  { %v1182_v52 = vpop.permute.xlu1 %1181  ;;  %v1180_v53 = vpop.permute.xlu2 %1179 }
 0x228   :  { %v1097_v54 = vpop.permute.xlu0 %1096 }
 0x229   :  { %1516 = vmatmul.msk.f32.vlgmr.msrb.gmra.mxu3 %vm104_vm1, %v1868_v15 }
 0x22a   :  { %1513 = vmatmul.msk.f32.vlgmr.msra.gmra.mxu2 %vm104_vm1, %v686_v29  ;;  %1527 = vmatpush.xpose.msk.msrb.mxu3 %vm104_vm1, %v1099_v50 }
 0x22b   :  { %1524 = vmatpush.xpose.msk.msra.mxu2 %vm104_vm1, %v1016_v47 }
 0x22d   :  { %v1265_v55 = vpop.permute.xlu1 %1264  ;;  %v1263_v56 = vpop.permute.xlu2 %1262 }
 0x230   :  { %v1348_v57 = vpop.permute.xlu0 %1347 }
 0x231   :  { %1522 = vmatmul.msk.f32.vlgmr.msra.gmra.mxu3 %vm104_vm1, %v931_v49 }
 0x232   :  { %1519 = vmatmul.msk.f32.vlgmr.msrb.gmra.mxu2 %vm104_vm1, %v848_v31  ;;  %1533 = vmatpush.xpose.msk.msra.mxu3 %vm104_vm1, %v1265_v55 }
 0x233   :  { %1530 = vmatpush.xpose.msk.msrb.mxu2 %vm104_vm1, %v1182_v52 }
 0x235   :  { %v1346_v58 = vpop.permute.xlu1 %1345  ;;  %v471_v59 = vpop.permute.xlu2 %470 }
 0x236   :  { %491 = vmatpush.msra.mxu0 %v471_v59 }
 0x238   :  { %v387_v60 = vpop.permute.xlu0 %386 }
 0x239   :  { %407 = vmatpush.msra.mxu1 %v387_v60  ;;  %1528 = vmatmul.msk.f32.vlgmr.msrb.gmra.mxu3 %vm104_vm1, %v1097_v54 }
 0x23a   :  { %1525 = vmatmul.msk.f32.vlgmr.msra.gmra.mxu2 %vm104_vm1, %v1014_v51 }
 0x23b   :  { %1536 = vmatpush.xpose.msk.msra.mxu2 %vm104_vm1, %v1348_v57 }
 0x23d   :  { %v555_v61 = vpop.permute.xlu1 %554  ;;  %v885_v31 = vpop.permute.xlu2 %884 }
 0x23e   :  { %575 = vmatpush.msrb.mxu1 %v555_v61 }
 0x240   :  { %v806_v32 = vpop.permute.xlu0 %805 }
 0x241   :  { %1534 = vmatmul.msk.f32.vlgmr.msra.gmra.mxu3 %vm104_vm1, %v1263_v56 }
 0x242   :  { %1531 = vmatmul.msk.f32.vlgmr.msrb.gmra.mxu2 %vm104_vm1, %v1180_v53 }
 0x245   :  { %v639_v62 = vpop.permute.xlu1 %638  ;;  %v968_v34 = vpop.permute.xlu2 %967 }
 0x246   :  { %659 = vmatpush.msrb.mxu0 %v639_v62 }
 0x248   :  { %v1134_v35 = vpop.permute.xlu0 %1133 }
 0x24a   :  { %1537 = vmatmul.msk.f32.vlgmr.msra.gmra.mxu2 %vm104_vm1, %v1346_v58 }
 0x24d   :  { %v723_v33 = vpop.permute.xlu1 %722 }
 0x255   :  { %v1051_v38 = vpop.permute.xlu1 %1050 }
 0x28c   :  { %v1959_v63 = vpop.f32.mrf.mxu2 }
 0x294   :  { %v1961_v0 = vpop.f32.mrf.mxu3 }
 0x295   :  { %v1963_v1 = vpop.f32.mrf.mxu2 }
 0x29c   :  { %v458_v2 = vpop.f32.mrf.mxu3 }
 0x29d   :  { %v374_v3 = vpop.f32.mrf.mxu2  ;;  %v461_v4 = vsel %vm129_vm2, %v458_v2, -inf }
 0x29e   :  { %462 = vmax.xlane.f32.xlu2 %v461_v4  ;;  %v377_v5 = vsel %vm129_vm2, %v374_v3, -inf }
 0x29f   :  { %378 = vmax.xlane.f32.xlu0 %v377_v5 }
 0x2a4   :  { %v626_v6 = vpop.f32.mrf.mxu3 }
 0x2a5   :  { %v542_v7 = vpop.f32.mrf.mxu2  ;;  %v629_v8 = vsel %vm129_vm2, %v626_v6, -inf }
 0x2a6   :  { %630 = vmax.xlane.f32.xlu2 %v629_v8  ;;  %v545_v9 = vsel %vm129_vm2, %v542_v7, -inf }
 0x2a7   :  { %546 = vmax.xlane.f32.xlu1 %v545_v9 }
 0x2ac   :  { %v1969_v10 = vpop.f32.mrf.mxu3 }
 0x2ad   :  { %v1971_v11 = vpop.f32.mrf.mxu2  ;;  %v796_v12 = vsel %vm129_vm2, %v1969_v10, -inf }
 0x2ae   :  { %v713_v13 = vsel %vm129_vm2, %v1971_v11, -inf  ;;  %797 = vmax.xlane.f32.xlu0 %v796_v12 }
 0x2af   :  { %714 = vmax.xlane.f32.xlu1 %v713_v13 }
 0x2b4   :  { %v1977_v14 = vpop.f32.mrf.mxu3 }
 0x2b5   :  { %v1979_v16 = vpop.f32.mrf.mxu2  ;;  %v958_v17 = vsel %vm129_vm2, %v1977_v14, -inf }
 0x2b6   :  { %v875_v18 = vsel %vm129_vm2, %v1979_v16, -inf }
 0x2b7   :  { %876 = vmax.xlane.f32.xlu2 %v875_v18  ;;  %959 = vmax.xlane.f32.xlu1 %v958_v17 }
 0x2bc   :  { %v1985_v19 = vpop.f32.mrf.mxu3 }
 0x2bd   :  { %v1987_v20 = vpop.f32.mrf.mxu2  ;;  %v1124_v26 = vsel %vm129_vm2, %v1985_v19, -inf }
 0x2be   :  { %v1041_v21 = vsel %vm129_vm2, %v1987_v20, -inf }
 0x2bf   :  { %1042 = vmax.xlane.f32.xlu0 %v1041_v21 }
 0x2c4   :  { %v1991_v22 = vpop.f32.mrf.mxu3 }
 0x2c5   :  { %v1993_v23 = vpop.f32.mrf.mxu2  ;;  %v1290_v24 = vsel %vm129_vm2, %v1991_v22, -inf }
 0x2c6   :  { %v1207_v25 = vsel %vm129_vm2, %v1993_v23, -inf  ;;  %1291 = vmax.xlane.f32.xlu2 %v1290_v24 }
 0x2c7   :  { %1208 = vmax.xlane.f32.xlu1 %v1207_v25  ;;  %1125 = vmax.xlane.f32.xlu0 %v1124_v26 }
 0x2cd   :  { %v2003_v28 = vpop.f32.mrf.mxu2 }
 0x2ce   :  { %v1373_v29 = vsel %vm129_vm2, %v2003_v28, -inf }
 0x2cf   :  { %300 = vadd.xlane.f32.xlu1 %v299_v27 }
 0x2d7   :  { %1374 = vmax.xlane.f32.xlu1 %v1373_v29 }
 0x2db   :  { %1299 = vrot.lane.b32.xlu0 %v1868_v15, %s1769_s26 }
 0x2de   :  { %1216 = vrot.lane.b32.xlu2 %v1868_v15, %s1767_s22 }
 0x2df   :  { %137 = vadd.xlane.f32.xlu1 %v136_v30 }
 0x2e3   :  { %1382 = vrot.lane.b32.xlu0 %v1868_v15, %s1770_s27 }
 0x30d   :  { %216 = vadd.xlane.f32.xlu0 %v215_v36 }
 0x311   :  { %v463_v37 = vpop.xlane.xlu2 %462 }
 0x312   :  { %v464_v39 = vsub.f32 %v458_v2, %v463_v37  ;;  %v379_v40 = vpop.xlane.xlu0 %378 }
 0x313   :  { %v380_v42 = vsub.f32 %v374_v3, %v379_v40 }
 0x314   :  { %v465_v43 = vmul.f32 1.442695, %v464_v39 }
 0x315   :  { %v381_v41 = vmul.f32 1.442695, %v380_v42 }
 0x316   :  { %1583 = vpow2.f32 %v465_v43 }
 0x317   :  { %1585 = vpow2.f32 %v381_v41 }
 0x319   :  { %v631_v44 = vpop.xlane.xlu2 %630 }
 0x31a   :  { %v632_v15 = vsub.f32 %v626_v6, %v631_v44  ;;  %v547_v45 = vpop.xlane.xlu1 %546 }
 0x31b   :  { %v548_v47 = vsub.f32 %v542_v7, %v547_v45 }
 0x31c   :  { %v2017_v48 = vpop.eup %1583  ;;  %v633_v49 = vmul.f32 1.442695, %v632_v15 }
 0x31d   :  { %v1586_v50 = vpop.eup %1585  ;;  %v549_v51 = vmul.f32 1.442695, %v548_v47  ;;  %1505 = vmatmul.msk.f32.vlgmr.msra.gmra.mxu0 %vm129_vm2, %v2017_v48 }
 0x31e   :  { %1587 = vpow2.f32 %v633_v49  ;;  %1502 = vmatmul.msk.f32.vlgmr.msra.gmra.mxu1 %vm129_vm2, %v1586_v50  ;;  %826 = vmatpush.msra.mxu0 %v806_v32  ;;  %v383_v46 = vsel %vm129_vm2, %v1586_v50, 0.0 }
 0x31f   :  { %1589 = vpow2.f32 %v549_v51  ;;  %743 = vmatpush.msra.mxu1 %v723_v33  ;;  %384 = vadd.xlane.f32.xlu2 %v383_v46 }
 0x321   :  { %v798_v52 = vpop.xlane.xlu0 %797 }
 0x322   :  { %v715_v53 = vpop.xlane.xlu1 %714  ;;  %v799_v54 = vsub.f32 %v1969_v10, %v798_v52 }
 0x323   :  { %v716_v55 = vsub.f32 %v1971_v11, %v715_v53 }
 0x324   :  { %v2025_v56 = vpop.eup %1587  ;;  %v800_v57 = vmul.f32 1.442695, %v799_v54 }
 0x325   :  { %v2027_v58 = vpop.eup %1589  ;;  %v717_v59 = vmul.f32 1.442695, %v716_v55  ;;  %1511 = vmatmul.msk.f32.vlgmr.msrb.gmra.mxu0 %vm129_vm2, %v2025_v56 }
 0x326   :  { %1591 = vpow2.f32 %v800_v57  ;;  %1508 = vmatmul.msk.f32.vlgmr.msrb.gmra.mxu1 %vm129_vm2, %v2027_v58  ;;  %988 = vmatpush.msrb.mxu0 %v968_v34 }
 0x327   :  { %1593 = vpow2.f32 %v717_v59  ;;  %905 = vmatpush.msrb.mxu1 %v885_v31 }
 0x32a   :  { %v877_v60 = vpop.xlane.xlu2 %876  ;;  %v960_v61 = vpop.xlane.xlu1 %959 }
 0x32b   :  { %v878_v62 = vsub.f32 %v1979_v16, %v877_v60  ;;  %v961_v2 = vsub.f32 %v1977_v14, %v960_v61  ;;  %v467_v61 = vsel %vm129_vm2, %v2017_v48, 0.0  ;;  %v635_v48 = vsel %vm129_vm2, %v2025_v56, 0.0 }
 0x32c   :  { %v1592_v3 = vpop.eup %1591 }
 0x32d   :  { %v2035_v4 = vpop.eup %1593  ;;  %v879_v5 = vmul.f32 1.442695, %v878_v62  ;;  %v962_v6 = vmul.f32 1.442695, %v961_v2  ;;  %1517 = vmatmul.msk.f32.vlgmr.msra.gmra.mxu0 %vm129_vm2, %v1592_v3  ;;  %v802_v7 = vsel %vm129_vm2, %v1592_v3, 0.0 }
 0x32e   :  { %1514 = vmatmul.msk.f32.vlgmr.msra.gmra.mxu1 %vm129_vm2, %v2035_v4  ;;  %1154 = vmatpush.msra.mxu0 %v1134_v35 }
 0x32f   :  { %1595 = vpow2.f32 %v879_v5  ;;  %1071 = vmatpush.msra.mxu1 %v1051_v38  ;;  %803 = vadd.xlane.f32.xlu2 %v802_v7  ;;  %v551_v5 = vsel %vm129_vm2, %v2027_v58, 0.0 }
 0x330   :  { %1597 = vpow2.f32 %v962_v6 }
 0x332   :  { %v1043_v8 = vpop.xlane.xlu0 %1042 }
 0x333   :  { %v1044_v9 = vsub.f32 %v1987_v20, %v1043_v8 }
 0x335   :  { %v2042_v10 = vpop.eup %1595  ;;  %v1045_v11 = vmul.f32 1.442695, %v1044_v9 }
 0x336   :  { %v2044_v12 = vpop.eup %1597  ;;  %1520 = vmatmul.msk.f32.vlgmr.msrb.gmra.mxu1 %vm129_vm2, %v2042_v10 }
 0x337   :  { %1599 = vpow2.f32 %v1045_v11  ;;  %1523 = vmatmul.msk.f32.vlgmr.msrb.gmra.mxu0 %vm129_vm2, %v2044_v12 }
 0x339   :  { %v1292_v13 = vpop.xlane.xlu2 %1291 }
 0x33a   :  { %v1209_v14 = vpop.xlane.xlu1 %1208  ;;  %v1293_v16 = vsub.f32 %v1991_v22, %v1292_v13  ;;  %v1126_v17 = vpop.xlane.xlu0 %1125 }
 0x33b   :  { %v1210_v18 = vsub.f32 %v1993_v23, %v1209_v14  ;;  %v1127_v20 = vsub.f32 %v1985_v19, %v1126_v17  ;;  %v719_v17 = vsel %vm129_vm2, %v2035_v4, 0.0 }
 0x33c   :  { %v1294_v21 = vmul.f32 1.442695, %v1293_v16 }
 0x33d   :  { %v1600_v24 = vpop.eup %1599  ;;  %v1211_v25 = vmul.f32 1.442695, %v1210_v18  ;;  %v1128_v26 = vmul.f32 1.442695, %v1127_v20 }
 0x33e   :  { %1601 = vpow2.f32 %v1294_v21  ;;  %1526 = vmatmul.msk.f32.vlgmr.msra.gmra.mxu1 %vm129_vm2, %v1600_v24  ;;  %v1047_v27 = vsel %vm129_vm2, %v1600_v24, 0.0 }
 0x33f   :  { %1603 = vpow2.f32 %v1211_v25  ;;  %1048 = vadd.xlane.f32.xlu2 %v1047_v27 }
 0x340   :  { %1605 = vpow2.f32 %v1128_v26 }
 0x341   :  { %v1217_v29 = vpop.permute.xlu2 %1216 }
 0x342   :  { %v301_v30 = vpop.xlane.xlu1 %300  ;;  %1237 = vmatpush.msrb.mxu1 %v1217_v29 }
 0x343   :  { %1607 = vrcp.f32 %v301_v30  ;;  %v339_v40 = vand.u32 2147483648, %v301_v30  ;;  %v337_v42 = vand.u32 2147483647, %v301_v30  ;;  %vm333_vm4 = vweird.f32 %v301_v30 }
 0x344   :  { %v1602_v22 = vpop.eup %1601 }
 0x345   :  { %v2055_v23 = vpop.eup %1603  ;;  %v1296_v19 = vsel %vm129_vm2, %v1602_v22, 0.0  ;;  %v340_v15 = vor.u32 1.1754944e-38, %v339_v40  ;;  %vm338_vm6 = vcmp.eq.f32.partialorder %v337_v42, 8.507059e+37 }
 0x346   :  { %v2058_v31 = vpop.eup %1605  ;;  %1532 = vmatmul.msk.f32.vlgmr.msrb.gmra.mxu1 %vm129_vm2, %v2055_v23 }
 0x347   :  { %1529 = vmatmul.msk.f32.vlgmr.msra.gmra.mxu0 %vm129_vm2, %v2058_v31  ;;  %1297 = vadd.xlane.f32.xlu2 %v1296_v19 }
 0x349   :  { %v1608_v32 = vpop.eup %1607 }
 0x34a   :  { %v329_v33 = vmul.f32 %v1608_v32, %v301_v30  ;;  %v1375_v34 = vpop.xlane.xlu1 %1374  ;;  %vm334_vm3 = vweird.f32 %v1608_v32 }
 0x34b   :  { %v1376_v35 = vsub.f32 %v2003_v28, %v1375_v34  ;;  %vm335_vm5 = vmor %vm333_vm4, %vm334_vm3 }
 0x34c   :  { %v330_v36 = vsub.f32 1.0, %v329_v33  ;;  %v1213_v33 = vsel %vm129_vm2, %v2055_v23, 0.0  ;;  %v881_v23 = vsel %vm129_vm2, %v2042_v10, 0.0 }
 0x34d   :  { %v1377_v37 = vmul.f32 1.442695, %v1376_v35  ;;  %v1300_v38 = vpop.permute.xlu0 %1299 }
 0x34e   :  { %v331_v39 = vmul.f32 %v1608_v32, %v330_v36  ;;  %1320 = vmatpush.msrb.mxu0 %v1300_v38 }
 0x34f   :  { %1609 = vpow2.f32 %v1377_v37  ;;  %1535 = vmatmul.msk.f32.vlgmr.msrb.gmra.mxu0 %vm129_vm2, %v1602_v22 }
 0x350   :  { %v332_v43 = vadd.f32 %v1608_v32, %v331_v39 }
 0x352   :  { %v138_v41 = vpop.xlane.xlu1 %137  ;;  %v336_v44 = vsel %vm335_vm5, %v1608_v32, %v332_v43 }
 0x353   :  { %1611 = vrcp.f32 %v138_v41  ;;  %v341_v28 = vsel %vm338_vm6, %v340_v15, %v336_v44  ;;  %v176_v52 = vand.u32 2147483648, %v138_v41  ;;  %v174_v54 = vand.u32 2147483647, %v138_v41 }
 0x354   :  { %v342_v49 = vmul.f32 %v341_v28, %v1961_v0  ;;  %vm170_vm8 = vweird.f32 %v138_v41  ;;  %v1130_v28 = vsel %vm129_vm2, %v2058_v31, 0.0 }
 0x355   :  { %v2066_v45 = vpop.eup %1609  ;;  %v1383_v47 = vpop.permute.xlu0 %1382  ;;  %v177_v57 = vor.u32 1.1754944e-38, %v176_v52  ;;  %vm175_vm10 = vcmp.eq.f32.partialorder %v174_v54, 8.507059e+37 }
 0x356   :  { %1403 = vmatpush.msra.mxu1 %v1383_v47  ;;  %344 = vrot.lane.b32.xlu1 %v342_v49, %s1745_s24  ;;  %v1379_v47 = vsel %vm129_vm2, %v2066_v45, 0.0 }
 0x357   :  { %1538 = vmatmul.msk.f32.vlgmr.msra.gmra.mxu1 %vm129_vm2, %v2066_v45 }
 0x359   :  { %v1612_v50 = vpop.eup %1611 }
 0x35a   :  { %v166_v51 = vmul.f32 %v1612_v50, %v138_v41  ;;  %vm171_vm7 = vweird.f32 %v1612_v50 }
 0x35b   :  { %vm172_vm9 = vmor %vm170_vm8, %vm171_vm7 }
 0x35c   :  { %v167_v46 = vsub.f32 1.0, %v166_v51 }
 0x35e   :  { %v168_v53 = vmul.f32 %v1612_v50, %v167_v46 }
 0x360   :  { %v169_v55 = vadd.f32 %v1612_v50, %v168_v53 }
 0x362   :  { %v173_v59 = vsel %vm172_vm9, %v1612_v50, %v169_v55 }
 0x363   :  { %v178_v0 = vsel %vm175_vm10, %v177_v57, %v173_v59 }
 0x364   :  { %v179_v60 = vmul.f32 %v178_v0, %v1959_v63 }
 0x366   :  { %180 = vst.msk [vmem:[#allocation2] sm:$0xff] %vm104_vm1, %v179_v60 }
 0x380   :  { %v217_v62 = vpop.xlane.xlu0 %216  ;;  %468 = vadd.xlane.f32.xlu1 %v467_v61 }
 0x381   :  { %1613 = vrcp.f32 %v217_v62  ;;  %v255_v7 = vand.u32 2147483648, %v217_v62  ;;  %v253_v9 = vand.u32 2147483647, %v217_v62  ;;  %vm249_vm12 = vweird.f32 %v217_v62 }
 0x383   :  { %v256_v11 = vor.u32 1.1754944e-38, %v255_v7  ;;  %vm254_vm14 = vcmp.eq.f32.partialorder %v253_v9, 8.507059e+37 }
 0x387   :  { %v1614_v2 = vpop.eup %1613 }
 0x388   :  { %v245_v3 = vmul.f32 %v1614_v2, %v217_v62  ;;  %552 = vadd.xlane.f32.xlu1 %v551_v5  ;;  %vm250_vm11 = vweird.f32 %v1614_v2 }
 0x389   :  { %vm251_vm13 = vmor %vm249_vm12, %vm250_vm11  ;;  %vm263_vm11 = vcmask 64544  }
 0x38a   :  { %v246_v6 = vsub.f32 1.0, %v245_v3 }
 0x38c   :  { %v247_v8 = vmul.f32 %v1614_v2, %v246_v6 }
 0x38e   :  { %v248_v63 = vadd.f32 %v1614_v2, %v247_v8 }
 0x390   :  { %v252_v13 = vsel %vm251_vm13, %v1614_v2, %v248_v63  ;;  %636 = vadd.xlane.f32.xlu1 %v635_v48  ;;  %vm347_vm13 = vcmask 97344  }
 0x391   :  { %v257_v14 = vsel %vm254_vm14, %v256_v11, %v252_v13  ;;  %vm431_vm14 = vcmask 130144  }
 0x392   :  { %v385_v16 = vpop.xlane.xlu2 %384  ;;  %v258_v58 = vmul.f32 %v257_v14, %v1963_v1  ;;  %v964_v1 = vsel %vm129_vm2, %v2044_v12, 0.0 }
 0x393   :  { %1615 = vrcp.f32 %v385_v16  ;;  %v423_v24 = vand.u32 2147483648, %v385_v16  ;;  %v421_v25 = vand.u32 2147483647, %v385_v16  ;;  %vm417_vm3 = vweird.f32 %v385_v16 }
 0x394   :  { %260 = vrot.lane.b32.xlu0 %v258_v58, %s1771_s28 }
 0x395   :  { %v424_v29 = vor.u32 1.1754944e-38, %v423_v24  ;;  %vm422_vm5 = vcmp.eq.f32.partialorder %v421_v25, 8.507059e+37 }
 0x398   :  { %720 = vadd.xlane.f32.xlu1 %v719_v17 }
 0x399   :  { %v1616_v18 = vpop.eup %1615 }
 0x39a   :  { %v413_v20 = vmul.f32 %v1616_v18, %v385_v16  ;;  %vm418_vm15 = vweird.f32 %v1616_v18  ;;  %v2084_v26 = vpop.f32.mrf.mxu0 }
 0x39b   :  { %vm419_vm4 = vmor %vm417_vm3, %vm418_vm15  ;;  %v409_v22 = vpop.f32.mrf.mxu1 }
 0x39c   :  { %v414_v21 = vsub.f32 1.0, %v413_v20 }
 0x39e   :  { %v415_v56 = vmul.f32 %v1616_v18, %v414_v21 }
 0x3a0   :  { %v416_v27 = vadd.f32 %v1616_v18, %v415_v56  ;;  %965 = vadd.xlane.f32.xlu1 %v964_v1 }
 0x3a2   :  { %v420_v30 = vsel %vm419_vm4, %v1616_v18, %v416_v27  ;;  %v804_v4 = vpop.xlane.xlu2 %803  ;;  %v2091_v35 = vpop.f32.mrf.mxu0 }
 0x3a3   :  { %v425_v19 = vsel %vm422_vm5, %v424_v29, %v420_v30  ;;  %1617 = vrcp.f32 %v804_v4  ;;  %v842_v37 = vand.u32 2147483648, %v804_v4  ;;  %v840_v39 = vand.u32 2147483647, %v804_v4  ;;  %v577_v2 = vpop.f32.mrf.mxu1 }
 0x3a4   :  { %v426_v32 = vmul.f32 %v425_v19, %v409_v22  ;;  %vm836_vm7 = vweird.f32 %v804_v4 }
 0x3a5   :  { %v843_v42 = vor.u32 1.1754944e-38, %v842_v37  ;;  %vm841_vm9 = vcmp.eq.f32.partialorder %v840_v39, 8.507059e+37 }
 0x3a6   :  { %428 = vrot.lane.b32.xlu2 %v426_v32, %s1772_s1 }
 0x3a8   :  { %1214 = vadd.xlane.f32.xlu1 %v1213_v33 }
 0x3a9   :  { %v1618_v34 = vpop.eup %1617 }
 0x3aa   :  { %v832_v12 = vmul.f32 %v1618_v34, %v804_v4  ;;  %vm837_vm6 = vweird.f32 %v1618_v34  ;;  %v828_v41 = vpop.f32.mrf.mxu0 }
 0x3ab   :  { %vm838_vm8 = vmor %vm836_vm7, %vm837_vm6  ;;  %v745_v56 = vpop.f32.mrf.mxu1 }
 0x3ac   :  { %v833_v36 = vsub.f32 1.0, %v832_v12 }
 0x3ae   :  { %v834_v38 = vmul.f32 %v1618_v34, %v833_v36 }
 0x3b0   :  { %v835_v40 = vadd.f32 %v1618_v34, %v834_v38 }
 0x3b2   :  { %v839_v43 = vsel %vm838_vm8, %v1618_v34, %v835_v40  ;;  %v2100_v51 = vpop.xlane.xlu2 %1048 }
 0x3b3   :  { %v844_v44 = vsel %vm841_vm9, %v843_v42, %v839_v43 }
 0x3b4   :  { %v845_v15 = vmul.f32 %v844_v44, %v828_v41  ;;  %v2123_v41 = vpop.f32.mrf.mxu1  ;;  %v990_v44 = vpop.f32.mrf.mxu0 }
 0x3b6   :  { %846 = vst.msk [vmem:[#allocation2 + $0x8] sm:$0xff] %vm104_vm1, %v845_v15 }
 0x3ba   :  { %v2102_v55 = vpop.xlane.xlu2 %1297 }
 0x3be   :  { %882 = vadd.xlane.f32.xlu0 %v881_v23 }
 0x3c6   :  { %1131 = vadd.xlane.f32.xlu0 %v1130_v28 }
 0x3c8   :  { %v345_v49 = vpop.permute.xlu1 %344 }
 0x3ce   :  { %1380 = vadd.xlane.f32.xlu0 %v1379_v47 }
 0x3f3   :  { %v469_v50 = vpop.xlane.xlu1 %468 }
 0x3f4   :  { %1619 = vrcp.f32 %v469_v50  ;;  %v507_v10 = vand.u32 2147483648, %v469_v50  ;;  %v505_v31 = vand.u32 2147483647, %v469_v50  ;;  %vm501_vm10 = vweird.f32 %v469_v50 }
 0x3f6   :  { %v508_v0 = vor.u32 1.1754944e-38, %v507_v10  ;;  %vm506_vm12 = vcmp.eq.f32.partialorder %v505_v31, 8.507059e+37  ;;  %v1085_v10 = vand.u32 2147483647, %v2100_v51 }
 0x3fa   :  { %v1620_v46 = vpop.eup %1619 }
 0x3fb   :  { %v497_v52 = vmul.f32 %v1620_v46, %v469_v50  ;;  %v553_v53 = vpop.xlane.xlu1 %552  ;;  %vm502_vm1 = vweird.f32 %v1620_v46 }
 0x3fc   :  { %1621 = vrcp.f32 %v553_v53  ;;  %vm503_vm2 = vmor %vm501_vm10, %vm502_vm1  ;;  %v591_v8 = vand.u32 2147483648, %v553_v53  ;;  %v589_v11 = vand.u32 2147483647, %v553_v53  ;;  %vm585_vm3 = vweird.f32 %v553_v53 }
 0x3fd   :  { %v498_v54 = vsub.f32 1.0, %v497_v52  ;;  %v1087_v52 = vand.u32 2147483648, %v2100_v51 }
 0x3fe   :  { %v592_v14 = vor.u32 1.1754944e-38, %v591_v8  ;;  %vm590_vm5 = vcmp.eq.f32.partialorder %v589_v11, 8.507059e+37  ;;  %v1336_v11 = vand.u32 2147483648, %v2102_v55 }
 0x3ff   :  { %v499_v57 = vmul.f32 %v1620_v46, %v498_v54 }
 0x400   :  { %v429_v63 = vpop.permute.xlu2 %428 }
 0x401   :  { %v500_v59 = vadd.f32 %v1620_v46, %v499_v57 }
 0x402   :  { %v1622_v45 = vpop.eup %1621 }
 0x403   :  { %v581_v60 = vmul.f32 %v1622_v45, %v553_v53  ;;  %v637_v61 = vpop.xlane.xlu1 %636  ;;  %v504_v62 = vsel %vm503_vm2, %v1620_v46, %v500_v59  ;;  %vm586_vm15 = vweird.f32 %v1622_v45 }
 0x404   :  { %1623 = vrcp.f32 %v637_v61  ;;  %v509_v3 = vsel %vm506_vm12, %v508_v0, %v504_v62  ;;  %vm587_vm4 = vmor %vm585_vm3, %vm586_vm15  ;;  %v673_v1 = vand.u32 2147483647, %v637_v61  ;;  %vm669_vm7 = vweird.f32 %v637_v61 }
 0x405   :  { %1625 = vrcp.f32 %v2100_v51  ;;  %v582_v5 = vsub.f32 1.0, %v581_v60  ;;  %v510_v7 = vmul.f32 %v509_v3, %v2084_v26  ;;  %v675_v26 = vand.u32 2147483648, %v637_v61 }
 0x406   :  { %v261_v6 = vpop.permute.xlu0 %260  ;;  %vm674_vm9 = vcmp.eq.f32.partialorder %v673_v1, 8.507059e+37  ;;  %vm1081_vm3 = vweird.f32 %v2100_v51  ;;  %v1088_v62 = vor.u32 1.1754944e-38, %v1087_v52 }
 0x407   :  { %264 = vst.msk [vmem:[#allocation2] sm:$0xff] %vm263_vm11, %v261_v6  ;;  %v583_v9 = vmul.f32 %v1622_v45, %v582_v5  ;;  %512 = vrot.lane.b32.xlu0 %v510_v7, %s1773_s0  ;;  %v676_v22 = vor.u32 1.1754944e-38, %v675_v26  ;;  %v1073_v5 = vpop.f32.mrf.mxu1 }
 0x408   :  { %348 = vst.msk [vmem:[#allocation2] sm:$0xff] %vm347_vm13, %v345_v49 }
 0x409   :  { %432 = vst.msk [vmem:[#allocation2] sm:$0xff] %vm431_vm14, %v429_v63  ;;  %v584_v48 = vadd.f32 %v1622_v45, %v583_v9 }
 0x40a   :  { %v1624_v13 = vpop.eup %1623 }
 0x40b   :  { %v2110_v16 = vpop.eup %1625  ;;  %v665_v58 = vmul.f32 %v1624_v13, %v637_v61  ;;  %v721_v17 = vpop.xlane.xlu1 %720  ;;  %v588_v18 = vsel %vm587_vm4, %v1622_v45, %v584_v48  ;;  %vm670_vm6 = vweird.f32 %v1624_v13 }
 0x40c   :  { %1627 = vrcp.f32 %v721_v17  ;;  %v593_v20 = vsel %vm590_vm5, %v592_v14, %v588_v18  ;;  %v1077_v25 = vmul.f32 %v2110_v16, %v2100_v51  ;;  %vm671_vm8 = vmor %vm669_vm7, %vm670_vm6  ;;  %v759_v39 = vand.u32 2147483648, %v721_v17 }
 0x40d   :  { %v666_v21 = vsub.f32 1.0, %v665_v58  ;;  %v594_v24 = vmul.f32 %v593_v20, %v577_v2  ;;  %1629 = vrcp.f32 %v2102_v55  ;;  %v757_v43 = vand.u32 2147483647, %v721_v17  ;;  %v2139_v2 = vpop.f32.mrf.mxu0 }
 0x40e   :  { %v1078_v4 = vsub.f32 1.0, %v1077_v25  ;;  %vm753_vm10 = vweird.f32 %v721_v17  ;;  %vm1082_vm2 = vweird.f32 %v2110_v16  ;;  %v760_v28 = vor.u32 1.1754944e-38, %v759_v39 }
 0x40f   :  { %v667_v27 = vmul.f32 %v1624_v13, %v666_v21  ;;  %596 = vrot.lane.b32.xlu1 %v594_v24, %s1774_s29  ;;  %vm758_vm15 = vcmp.eq.f32.partialorder %v757_v43, 8.507059e+37  ;;  %vm2129_vm4 = vmor %vm1081_vm3, %vm1082_vm2  ;;  %vm1086_vm6 = vcmp.eq.f32.partialorder %v1085_v10, 8.507059e+37  ;;  %v1334_v14 = vand.u32 2147483647, %v2102_v55  ;;  %v1239_v1 = vpop.f32.mrf.mxu1 }
 0x410   :  { %v1079_v38 = vmul.f32 %v2110_v16, %v1078_v4  ;;  %v1337_v24 = vor.u32 1.1754944e-38, %v1336_v11 }
 0x411   :  { %v668_v29 = vadd.f32 %v1624_v13, %v667_v27 }
 0x412   :  { %v1628_v30 = vpop.eup %1627 }
 0x413   :  { %v749_v19 = vmul.f32 %v1628_v30, %v721_v17  ;;  %v966_v32 = vpop.xlane.xlu1 %965  ;;  %v672_v33 = vsel %vm671_vm8, %v1624_v13, %v668_v29  ;;  %v2116_v34 = vpop.eup %1629  ;;  %vm754_vm1 = vweird.f32 %v1628_v30 }
 0x414   :  { %1631 = vrcp.f32 %v966_v32  ;;  %v677_v12 = vsel %vm674_vm9, %v676_v22, %v672_v33  ;;  %v1326_v40 = vmul.f32 %v2116_v34, %v2102_v55  ;;  %vm755_vm12 = vmor %vm753_vm10, %vm754_vm1  ;;  %v1004_v45 = vand.u32 2147483648, %v966_v32 }
 0x415   :  { %v750_v36 = vsub.f32 1.0, %v749_v19  ;;  %v678_v37 = vmul.f32 %v677_v12, %v2091_v35  ;;  %v1080_v35 = vadd.f32 %v2110_v16, %v1079_v38  ;;  %v1002_v61 = vand.u32 2147483647, %v966_v32  ;;  %v1322_v25 = vpop.f32.mrf.mxu0 }
 0x416   :  { %v1327_v47 = vsub.f32 1.0, %v1326_v40  ;;  %vm998_vm7 = vweird.f32 %v966_v32  ;;  %vm1331_vm8 = vweird.f32 %v2116_v34  ;;  %v1005_v7 = vor.u32 1.1754944e-38, %v1004_v45 }
 0x417   :  { %v751_v42 = vmul.f32 %v1628_v30, %v750_v36  ;;  %680 = vrot.lane.b32.xlu2 %v678_v37, %s1775_s2  ;;  %v1084_v59 = vsel %vm2129_vm4, %v2110_v16, %v1080_v35  ;;  %vm1003_vm1 = vcmp.eq.f32.partialorder %v1002_v61, 8.507059e+37  ;;  %vm1330_vm10 = vweird.f32 %v2102_v55 }
 0x418   :  { %v1328_v0 = vmul.f32 %v2116_v34, %v1327_v47  ;;  %v1089_v6 = vsel %vm1086_vm6, %v1088_v62, %v1084_v59  ;;  %vm1332_vm2 = vmor %vm1330_vm10, %vm1331_vm8  ;;  %v1405_v62 = vpop.f32.mrf.mxu1 }
 0x419   :  { %v752_v15 = vadd.f32 %v1628_v30, %v751_v42  ;;  %v1090_v13 = vmul.f32 %v1089_v6, %v1073_v5  ;;  %v1433_v5 = vld [vmem:[#allocation8 + $0x18] sm:$0xff]  ;;  %v1432_v6 = vld [vmem:[#allocation8 + $0x10] sm:$0xff] }
 0x41a   :  { %v1632_v23 = vpop.eup %1631  ;;  %v1329_v8 = vadd.f32 %v2116_v34, %v1328_v0  ;;  %1456 = vmatpush.msrb.mxu3 %v1433_v5 }
 0x41b   :  { %v994_v49 = vmul.f32 %v1632_v23, %v966_v32  ;;  %v1215_v50 = vpop.xlane.xlu1 %1214  ;;  %v756_v46 = vsel %vm755_vm12, %v1628_v30, %v752_v15  ;;  %vm999_vm5 = vweird.f32 %v1632_v23 }
 0x41c   :  { %1633 = vrcp.f32 %v1215_v50  ;;  %v761_v53 = vsel %vm758_vm15, %v760_v28, %v756_v46  ;;  %vm1000_vm9 = vmor %vm998_vm7, %vm999_vm5  ;;  %v1253_v17 = vand.u32 2147483648, %v1215_v50  ;;  %v1333_v18 = vsel %vm1332_vm2, %v2116_v34, %v1329_v8  ;;  %1457 = vmatpush.msrb.mxu3 %v1432_v6 }
 0x41d   :  { %v995_v57 = vsub.f32 1.0, %v994_v49  ;;  %v762_v31 = vmul.f32 %v761_v53, %v745_v56  ;;  %v1251_v21 = vand.u32 2147483647, %v1215_v50  ;;  %vm1335_vm15 = vcmp.eq.f32.partialorder %v1334_v14, 8.507059e+37 }
 0x41e   :  { %vm1247_vm3 = vweird.f32 %v1215_v50  ;;  %v1338_v26 = vsel %vm1335_vm15, %v1337_v24, %v1333_v18  ;;  %v1254_v55 = vor.u32 1.1754944e-38, %v1253_v17  ;;  %v1576_v24 = vld [vmem:[%s2183_s3] ss:$0 sm:$0xff] }
 0x41f   :  { %v996_v60 = vmul.f32 %v1632_v23, %v995_v57  ;;  %764 = vrot.lane.b32.xlu0 %v762_v31, %s1776_s30  ;;  %vm1252_vm5 = vcmp.eq.f32.partialorder %v1251_v21, 8.507059e+37  ;;  %v1339_v30 = vmul.f32 %v1338_v26, %v1322_v25 }
 0x421   :  { %v997_v51 = vadd.f32 %v1632_v23, %v996_v60 }
 0x422   :  { %v1634_v3 = vpop.eup %1633 }
 0x423   :  { %v1243_v9 = vmul.f32 %v1634_v3, %v1215_v50  ;;  %v1001_v63 = vsel %vm1000_vm9, %v1632_v23, %v997_v51  ;;  %vm1248_vm12 = vweird.f32 %v1634_v3 }
 0x424   :  { %v1006_v48 = vsel %vm1003_vm1, %v1005_v7, %v1001_v63  ;;  %vm1249_vm4 = vmor %vm1247_vm3, %vm1248_vm12  ;;  %v1430_v7 = vld [vmem:[#allocation8] sm:$0xff] }
 0x425   :  { %v1244_v16 = vsub.f32 1.0, %v1243_v9  ;;  %v1007_v58 = vmul.f32 %v1006_v48, %v990_v44 }
 0x427   :  { %v1245_v20 = vmul.f32 %v1634_v3, %v1244_v16  ;;  %1009 = vrot.lane.b32.xlu2 %v1007_v58, %s1745_s24  ;;  %1092 = vrot.lane.b32.xlu0 %v1090_v13, %s1772_s1 }
 0x429   :  { %v1246_v56 = vadd.f32 %v1634_v3, %v1245_v20 }
 0x42b   :  { %v1250_v27 = vsel %vm1249_vm4, %v1634_v3, %v1246_v56 }
 0x42c   :  { %v1255_v29 = vsel %vm1252_vm5, %v1254_v55, %v1250_v27 }
 0x42d   :  { %v1256_v4 = vmul.f32 %v1255_v29, %v1239_v1 }
 0x42f   :  { %1258 = vrot.lane.b32.xlu2 %v1256_v4, %s1774_s29  ;;  %1341 = vrot.lane.b32.xlu0 %v1339_v30, %s1775_s2 }
 0x431   :  { %v883_v22 = vpop.xlane.xlu0 %882 }
 0x432   :  { %1635 = vrcp.f32 %v883_v22  ;;  %v921_v12 = vand.u32 2147483648, %v883_v22  ;;  %v919_v37 = vand.u32 2147483647, %v883_v22  ;;  %vm915_vm7 = vweird.f32 %v883_v22 }
 0x434   :  { %v922_v40 = vor.u32 1.1754944e-38, %v921_v12  ;;  %vm920_vm9 = vcmp.eq.f32.partialorder %v919_v37, 8.507059e+37 }
 0x438   :  { %v1636_v19 = vpop.eup %1635 }
 0x439   :  { %v911_v32 = vmul.f32 %v1636_v19, %v883_v22  ;;  %v1132_v33 = vpop.xlane.xlu0 %1131  ;;  %vm916_vm6 = vweird.f32 %v1636_v19 }
 0x43a   :  { %1637 = vrcp.f32 %v1132_v33  ;;  %vm917_vm8 = vmor %vm915_vm7, %vm916_vm6  ;;  %v1170_v28 = vand.u32 2147483648, %v1132_v33  ;;  %v1168_v49 = vand.u32 2147483647, %v1132_v33  ;;  %vm1164_vm10 = vweird.f32 %v1132_v33 }
 0x43b   :  { %v912_v34 = vsub.f32 1.0, %v911_v32  ;;  %vm515_vm6 = vcmask 162944   ;;  %vm599_vm7 = vcmask 195744  }
 0x43c   :  { %v1171_v52 = vor.u32 1.1754944e-38, %v1170_v28  ;;  %vm1169_vm12 = vcmp.eq.f32.partialorder %v1168_v49, 8.507059e+37 }
 0x43d   :  { %v913_v36 = vmul.f32 %v1636_v19, %v912_v34 }
 0x43f   :  { %v914_v38 = vadd.f32 %v1636_v19, %v913_v36 }
 0x440   :  { %v1638_v39 = vpop.eup %1637 }
 0x441   :  { %v1160_v42 = vmul.f32 %v1638_v39, %v1132_v33  ;;  %v1381_v43 = vpop.xlane.xlu0 %1380  ;;  %v918_v44 = vsel %vm917_vm8, %v1636_v19, %v914_v38  ;;  %vm1165_vm1 = vweird.f32 %v1638_v39  ;;  %vm683_vm8 = vcmask 228544  }
 0x442   :  { %1639 = vrcp.f32 %v1381_v43  ;;  %v923_v15 = vsel %vm920_vm9, %v922_v40, %v918_v44  ;;  %vm1166_vm2 = vmor %vm1164_vm10, %vm1165_vm1  ;;  %v1419_v59 = vand.u32 2147483648, %v1381_v43  ;;  %v1417_v45 = vand.u32 2147483647, %v1381_v43 }
 0x443   :  { %v1161_v23 = vsub.f32 1.0, %v1160_v42  ;;  %v924_v35 = vmul.f32 %v923_v15, %v2123_v41  ;;  %vm1413_vm3 = vweird.f32 %v1381_v43  ;;  %vm767_vm9 = vcmask 261344  }
 0x444   :  { %v1420_v60 = vor.u32 1.1754944e-38, %v1419_v59  ;;  %vm1418_vm5 = vcmp.eq.f32.partialorder %v1417_v45, 8.507059e+37 }
 0x445   :  { %v1162_v47 = vmul.f32 %v1638_v39, %v1161_v23  ;;  %926 = vrot.lane.b32.xlu1 %v924_v35, %s1771_s28 }
 0x447   :  { %v1163_v50 = vadd.f32 %v1638_v39, %v1162_v47 }
 0x448   :  { %v1640_v46 = vpop.eup %1639 }
 0x449   :  { %v1409_v53 = vmul.f32 %v1640_v46, %v1381_v43  ;;  %v1167_v54 = vsel %vm1166_vm2, %v1638_v39, %v1163_v50  ;;  %vm1414_vm15 = vweird.f32 %v1640_v46 }
 0x44a   :  { %v1172_v10 = vsel %vm1169_vm12, %v1171_v52, %v1167_v54  ;;  %vm1415_vm4 = vmor %vm1413_vm3, %vm1414_vm15 }
 0x44b   :  { %v1410_v57 = vsub.f32 1.0, %v1409_v53  ;;  %v1173_v31 = vmul.f32 %v1172_v10, %v2139_v2  ;;  %v1431_v2 = vld [vmem:[#allocation8 + $0x8] sm:$0xff] }
 0x44c   :  { %1458 = vmatpush.msrb.mxu3 %v1431_v2 }
 0x44d   :  { %v1411_v41 = vmul.f32 %v1640_v46, %v1410_v57  ;;  %1175 = vrot.lane.b32.xlu1 %v1173_v31, %s1773_s0 }
 0x44e   :  { %1459 = vmatpush.msrb.mxu3 %v1430_v7 }
 0x44f   :  { %v1412_v0 = vadd.f32 %v1640_v46, %v1411_v41 }
 0x451   :  { %v1416_v61 = vsel %vm1415_vm4, %v1640_v46, %v1412_v0 }
 0x452   :  { %v1421_v51 = vsel %vm1418_vm5, %v1420_v60, %v1416_v61 }
 0x453   :  { %v1422_v3 = vmul.f32 %v1421_v51, %v1405_v62 }
 0x455   :  { %1424 = vrot.lane.b32.xlu1 %v1422_v3, %s1776_s30 }
 0x471   :  { %v681_v63 = vpop.permute.xlu2 %680 }
 0x479   :  { %v513_v8 = vpop.permute.xlu0 %512 }
 0x47a   :  { %516 = vst.msk [vmem:[#allocation2] sm:$0xff] %vm515_vm6, %v513_v8 }
 0x481   :  { %v597_v9 = vpop.permute.xlu1 %596  ;;  %v1010_v13 = vpop.permute.xlu2 %1009 }
 0x482   :  { %600 = vst.msk [vmem:[#allocation2] sm:$0xff] %vm599_vm7, %v597_v9 }
 0x483   :  { %684 = vst.msk [vmem:[#allocation2] sm:$0xff] %vm683_vm8, %v681_v63 }
 0x489   :  { %v1259_v17 = vpop.permute.xlu2 %1258 }
 0x491   :  { %v765_v11 = vpop.permute.xlu0 %764 }
 0x492   :  { %768 = vst.msk [vmem:[#allocation2] sm:$0xff] %vm767_vm9, %v765_v11 }
 0x499   :  { %v1428_v48 = vld [vmem:[#allocation2] sm:$0xff]  ;;  %v1093_v14 = vpop.permute.xlu0 %1092 }
 0x49a   :  { %1539 = vmatmul.msk.f32.vlgmr.msrb.gmra.mxu3 %vm71_vm0, %v1428_v48 }
 0x4a1   :  { %v1342_v18 = vpop.permute.xlu0 %1341 }
 0x4b7   :  { %v927_v16 = vpop.permute.xlu1 %926 }
 0x4b8   :  { %929 = vst.msk [vmem:[#allocation2 + $0x8] sm:$0xff] %vm263_vm11, %v927_v16 }
 0x4b9   :  { %1012 = vst.msk [vmem:[#allocation2 + $0x8] sm:$0xff] %vm347_vm13, %v1010_v13 }
 0x4ba   :  { %1095 = vst.msk [vmem:[#allocation2 + $0x8] sm:$0xff] %vm431_vm14, %v1093_v14 }
 0x4bf   :  { %v1176_v58 = vpop.permute.xlu1 %1175 }
 0x4c0   :  { %1178 = vst.msk [vmem:[#allocation2 + $0x8] sm:$0xff] %vm515_vm6, %v1176_v58 }
 0x4c1   :  { %1261 = vst.msk [vmem:[#allocation2 + $0x8] sm:$0xff] %vm599_vm7, %v1259_v17 }
 0x4c2   :  { %1344 = vst.msk [vmem:[#allocation2 + $0x8] sm:$0xff] %vm683_vm8, %v1342_v18 }
 0x4c7   :  { %v1425_v20 = vpop.permute.xlu1 %1424 }
 0x4c8   :  { %1427 = vst.msk [vmem:[#allocation2 + $0x8] sm:$0xff] %vm767_vm9, %v1425_v20 }
 0x4cf   :  { %v1429_v21 = vld [vmem:[#allocation2 + $0x8] sm:$0xff] }
 0x4d0   :  { %1540 = vmatmul.msk.f32.gmra.mxu3 %vm71_vm0, %v1429_v21 }
 0x51d   :  { %v1461_v56 = vpop.f32.mrf.mxu3 }
 0x51e   :  { %v1462_v25 = vadd.f32 %v1576_v24, %v1461_v56 }
 0x520   :  { %1467 = vst.msk [vmem:[#allocation9] sm:$0xff] %vm71_vm0, %v1462_v25 }
 0x553   :  { %v1464_v26 = vpop.f32.mrf.mxu3 }
 0x554   :  { %v1465_v55 = vadd.f32 %v1576_v24, %v1464_v26 }
 0x556   :  { %1468 = vst.msk [vmem:[#allocation9 + $0x8] sm:$0xff] %vm71_vm0, %v1465_v55 }
 0x557   :  { %1481 = dma.vmem_to_hbm [thread:$0]  %s1474_s8, 256, %s1476_s11, [#allocation5], %s1744_s23, %s1744_s23, %s1745_s24  }
 0x558   :  { %1741 = dma.done.wait [#allocation5], 256  }
 0x559   :  { %1742 = vsyncadd [#allocation5], 4294967040 }
 0x55a   :  { %1486 = vsyncpa [#allocation4], 1 }
 0x55b   :  { %1487 = vsyncpa [#allocation7], 1 }
 0x55c   :  { %1488 = vsyncpa [#allocation5], 1 }

</bundles_post_ra>
